<compile_context>
chip_gen: v7x
topology: tpu7x:2x2x1
jax: 0.10.0
libtpu: 0.0.40
codegen_flags: <defaults>
</compile_context>

<pallas_src>
import functools

import jax
import jax.numpy as jnp
import numpy as np
from jax.experimental import pallas as pl
from jax.experimental.pallas import tpu as pltpu


# ----------------------------------------------------------------------------
# Pallas kernel: whole CVAE forward for one batch tile.
# ----------------------------------------------------------------------------
def cvae_kernel(
    # batch-tiled inputs
    x_ref, eps_ref,
    # fused first layers: [embeder.fc1 | encoder.fc1]
    w1x_ref, b1x_ref,
    # embeder.fc2
    we2_ref, be2_ref,
    # encoder.fc2 and fused [fc31 | fc32] head
    wf2_ref, bf2_ref, whead_ref, bhead_ref,
    # decoder (fc1 split into z-part and emb-part)
    wd1z_ref, wd1e_ref, bd1_ref, wd2_ref, bd2_ref, wd3_ref, bd3_ref,
    # output
    out_ref,
    *, eh, z_dim,
):
    f32 = jnp.float32
    bf16 = jnp.bfloat16

    x = x_ref[...].astype(bf16)

    # ---- Fused first layers: relu(x @ [We1 | Wf1] + [be1 | bf1]) ----
    h1 = jnp.dot(x, w1x_ref[...], preferred_element_type=f32) + b1x_ref[...]
    h1 = jnp.maximum(h1, 0.0)
    h_emb = h1[:, :eh].astype(bf16)     # embeder branch   (split at 128-lane boundary)
    h_enc = h1[:, eh:].astype(bf16)     # encoder branch

    # ---- Embeder: emb = fc2(relu(fc1(x))) ----
    emb = jnp.dot(h_emb, we2_ref[...], preferred_element_type=f32) + be2_ref[...]

    # ---- Encoder: fc2 + fused mu/log_var head + reparameterization ----
    h2 = jnp.dot(h_enc, wf2_ref[...], preferred_element_type=f32) + bf2_ref[...]
    h2 = jnp.maximum(h2, 0.0).astype(bf16)
    r = jnp.dot(h2, whead_ref[...], preferred_element_type=f32) + bhead_ref[...]
    mu = r[:, :z_dim]
    log_var = r[:, z_dim:]
    eps = eps_ref[...][:, :z_dim]                       # lane-dense padded input
    z = eps * jnp.exp(0.5 * log_var) + mu               # f32 reparameterization

    # ---- Decoder: sigmoid(fc3(relu(fc2(relu(fc1(cat([z, emb]))))))) ----
    h3 = (jnp.dot(z.astype(bf16), wd1z_ref[...], preferred_element_type=f32)
          + jnp.dot(emb.astype(bf16), wd1e_ref[...], preferred_element_type=f32)
          + bd1_ref[...])
    h3 = jnp.maximum(h3, 0.0).astype(bf16)
    h4 = jnp.dot(h3, wd2_ref[...], preferred_element_type=f32) + bd2_ref[...]
    h4 = jnp.maximum(h4, 0.0).astype(bf16)
    logits = jnp.dot(h4, wd3_ref[...], preferred_element_type=f32) + bd3_ref[...]
    out_ref[...] = jax.nn.sigmoid(logits)


# ----------------------------------------------------------------------------
# Wrapper: builds grid / BlockSpecs and calls the kernel.
# ----------------------------------------------------------------------------
def cvae_forward(x, eps, fp, *, batch_tile=None):
    B, x_dim = x.shape
    z_dim = fp["wd1z"].shape[0]
    eh = fp["we2"].shape[0]
    h_dim1 = fp["wd2"].shape[0]
    emb_dim = fp["we2"].shape[1]

    # Batch tile: multiple of 8 (f32 sublane).  For large B prefer 256-1024 so
    # M fills the MXU; on v7x make sure grid has >= 2 steps so the "parallel"
    # axis spans both TensorCores.
    tb = batch_tile if batch_tile is not None else min(B, 512)
    assert B % tb == 0 and tb % 8 == 0, "batch_tile must divide B and be a multiple of 8"
    grid = (B // tb,)

    # Lane-dense eps: pad the z_dim-wide noise up to a multiple of 128 lanes.
    eps_lanes = ((max(z_dim, 128) + 127) // 128) * 128
    eps_pad = jnp.pad(eps.astype(jnp.float32), ((0, 0), (0, eps_lanes - z_dim)))

    weight_order = ["w1x", "b1x", "we2", "be2", "wf2", "bf2", "whead", "bhead",
                    "wd1z", "wd1e", "bd1", "wd2", "bd2", "wd3", "bd3"]
    weights = [fp[k] for k in weight_order]

    # Batch-tiled specs for x / eps / output.
    def batch_spec(width):
        return pl.BlockSpec((tb, width), lambda i: (i, 0))

    # Weights/biases: whole-array, resident in VMEM, single-buffered
    # (no per-grid-step pipelining or double-buffer VMEM cost).
    w_specs = [pl.BlockSpec(memory_space=pltpu.MemorySpace.VMEM) for _ in weights]

    # Advisory cost estimate for XLA scheduling around this small custom call.
    flops_per_row = 2 * (x_dim * (eh + h_dim1) + eh * emb_dim + h_dim1 * h_dim1
                         + h_dim1 * 2 * z_dim + z_dim * h_dim1 + emb_dim * h_dim1
                         + h_dim1 * h_dim1 + h_dim1 * x_dim)
    bytes_accessed = (x.size * x.dtype.itemsize
                      + eps_pad.size * eps_pad.dtype.itemsize
                      + sum(int(w.size) * w.dtype.itemsize for w in weights)
                      + B * x_dim * 4)
    cost = pl.CostEstimate(flops=int(B * flops_per_row),
                           transcendentals=int(B * (z_dim + x_dim)),
                           bytes_accessed=int(bytes_accessed))

    kernel = functools.partial(cvae_kernel, eh=eh, z_dim=z_dim)
    return pl.pallas_call(
        kernel,
        out_shape=jax.ShapeDtypeStruct((B, x_dim), jnp.float32),
        grid=grid,
        in_specs=[batch_spec(x_dim), batch_spec(eps_lanes)] + w_specs,
        out_specs=batch_spec(x_dim),
        compiler_params=pltpu.CompilerParams(
            dimension_semantics=("parallel",),
            vmem_limit_bytes=32 * 1024 * 1024),
        cost_estimate=cost,
    )(x, eps_pad, *weights)


# ----------------------------------------------------------------------------
# Deterministic parameter construction (PyTorch Linear fan-in uniform style).
# Weights stored as (in_features, out_features) so y = x @ W + b.
# ----------------------------------------------------------------------------
def _linear(key, fan_in, fan_out):
    kw, kb = jax.random.split(key)
    bound = 1.0 / np.sqrt(fan_in)
    w = jax.random.uniform(kw, (fan_in, fan_out), jnp.float32, -bound, bound)
    b = jax.random.uniform(kb, (1, fan_out), jnp.float32, -bound, bound)
    return w, b


def make_params(key, x_dim, h_dim1, z_dim, emb_dim):
    eh = max(x_dim // 2, emb_dim)
    keys = jax.random.split(key, 9)
    p = {}
    # Embeder (centers parameter is unused in forward)
    p["we1"], p["be1"] = _linear(keys[0], x_dim, eh)
    p["we2"], p["be2"] = _linear(keys[1], eh, emb_dim)
    # Encoder
    p["wf1"], p["bf1"] = _linear(keys[2], x_dim, h_dim1)
    p["wf2"], p["bf2"] = _linear(keys[3], h_dim1, h_dim1)
    p["wmu"], p["bmu"] = _linear(keys[4], h_dim1, z_dim)
    p["wlv"], p["blv"] = _linear(keys[5], h_dim1, z_dim)
    # Decoder
    p["wd1"], p["bd1"] = _linear(keys[6], z_dim + emb_dim, h_dim1)
    p["wd2"], p["bd2"] = _linear(keys[7], h_dim1, h_dim1)
    p["wd3"], p["bd3"] = _linear(keys[8], h_dim1, x_dim)
    return p


def prepare_params(p, z_dim, compute_dtype=jnp.bfloat16):
    """Fuse / split / cast the natural parameters into the kernel layout."""
    c = lambda w: w.astype(compute_dtype)
    fp = {}
    # fused first layers (embeder.fc1 | encoder.fc1)
    fp["w1x"] = c(jnp.concatenate([p["we1"], p["wf1"]], axis=1))
    fp["b1x"] = jnp.concatenate([p["be1"], p["bf1"]], axis=1)
    fp["we2"], fp["be2"] = c(p["we2"]), p["be2"]
    fp["wf2"], fp["bf2"] = c(p["wf2"]), p["bf2"]
    # fused mu/log_var head
    fp["whead"] = c(jnp.concatenate([p["wmu"], p["wlv"]], axis=1))
    fp["bhead"] = jnp.concatenate([p["bmu"], p["blv"]], axis=1)
    # decoder fc1 split: cat([z, emb]) @ W == z @ W[:z] + emb @ W[z:]
    fp["wd1z"], fp["wd1e"], fp["bd1"] = c(p["wd1"][:z_dim]), c(p["wd1"][z_dim:]), p["bd1"]
    fp["wd2"], fp["bd2"] = c(p["wd2"]), p["bd2"]
    fp["wd3"], fp["bd3"] = c(p["wd3"]), p["bd3"]
    return fp


# ----------------------------------------------------------------------------
# Pure-JAX reference (mirrors the PyTorch forward) for correctness checking.
# matmul_dtype=bfloat16 mirrors the kernel's precision policy exactly.
# ----------------------------------------------------------------------------
def cvae_ref(x, eps, p, matmul_dtype=jnp.float32):
    def dot(a, w):
        return jnp.dot(a.astype(matmul_dtype), w.astype(matmul_dtype),
                       preferred_element_type=jnp.float32)
    relu = lambda v: jnp.maximum(v, 0.0)
    # Embeder
    h = relu(dot(x, p["we1"]) + p["be1"])
    emb = dot(h, p["we2"]) + p["be2"]
    # Encoder
    h = relu(dot(x, p["wf1"]) + p["bf1"])
    h = relu(dot(h, p["wf2"]) + p["bf2"])
    mu = dot(h, p["wmu"]) + p["bmu"]
    log_var = dot(h, p["wlv"]) + p["blv"]
    z = eps * jnp.exp(0.5 * log_var) + mu
    # Decoder
    zc = jnp.concatenate([z, emb], axis=1)
    h = relu(dot(zc, p["wd1"]) + p["bd1"])
    h = relu(dot(h, p["wd2"]) + p["bd2"])
    return jax.nn.sigmoid(dot(h, p["wd3"]) + p["bd3"])


if __name__ == "__main__":
    # Small shapes consistent with the module.
    B, x_dim, h_dim1, z_dim, emb_dim = 64, 256, 128, 64, 128

    key = jax.random.PRNGKey(0)
    k_params, k_x, k_eps = jax.random.split(key, 3)

    params = make_params(k_params, x_dim, h_dim1, z_dim, emb_dim)
    fused = prepare_params(params, z_dim)

    x = jax.random.uniform(k_x, (B, x_dim), jnp.float32)     # inputs in [0, 1]
    eps = jax.random.normal(k_eps, (B, z_dim), jnp.float32)  # reparam noise
    # TODO(synk): torch.randn_like noise is supplied externally (deterministic)
    # instead of in-kernel PRNG so the reference check is exact.

    out = cvae_forward(x, eps, fused, batch_tile=32)         # grid=(2,) -> both TCs on v7x
    out = jax.block_until_ready(out)

    ref = cvae_ref(x, eps, params, matmul_dtype=jnp.bfloat16)
    np.testing.assert_allclose(np.asarray(out), np.asarray(ref), rtol=5e-3, atol=5e-3)
    assert out.shape == (B, x_dim)
    print("KERNEL_OK")
</pallas_src>

<mosaic_0001>
module attributes {stable_mosaic.version = 11 : i64} {
  func.func @cvae_kernel(%arg0: i32, %arg1: memref<32x256xf32, #tpu.memory_space<vmem>>, %arg2: memref<32x128xf32, #tpu.memory_space<vmem>>, %arg3: memref<256x256xbf16, #tpu.memory_space<vmem>>, %arg4: memref<1x256xf32, #tpu.memory_space<vmem>>, %arg5: memref<128x128xbf16, #tpu.memory_space<vmem>>, %arg6: memref<1x128xf32, #tpu.memory_space<vmem>>, %arg7: memref<128x128xbf16, #tpu.memory_space<vmem>>, %arg8: memref<1x128xf32, #tpu.memory_space<vmem>>, %arg9: memref<128x128xbf16, #tpu.memory_space<vmem>>, %arg10: memref<1x128xf32, #tpu.memory_space<vmem>>, %arg11: memref<64x128xbf16, #tpu.memory_space<vmem>>, %arg12: memref<128x128xbf16, #tpu.memory_space<vmem>>, %arg13: memref<1x128xf32, #tpu.memory_space<vmem>>, %arg14: memref<128x128xbf16, #tpu.memory_space<vmem>>, %arg15: memref<1x128xf32, #tpu.memory_space<vmem>>, %arg16: memref<128x256xbf16, #tpu.memory_space<vmem>>, %arg17: memref<1x256xf32, #tpu.memory_space<vmem>>, %arg18: memref<32x256xf32, #tpu.memory_space<vmem>>) attributes {dimension_semantics = [#tpu.dimension_semantics<parallel>], iteration_bounds = array<i64: 2>, scalar_prefetch = 0 : i64, scratch_operands = 0 : i64, tpu.core_type = #tpu.core_type<tc>, window_params = [{transform_indices = @transform_0, window_bounds = array<i64: 32, 256>}, {transform_indices = @transform_1, window_bounds = array<i64: 32, 128>}, {pipeline_mode = #tpu.pipeline_mode<synchronous>, transform_indices = @transform_2, window_bounds = array<i64: 256, 256>}, {pipeline_mode = #tpu.pipeline_mode<synchronous>, transform_indices = @transform_3, window_bounds = array<i64: 1, 256>}, {pipeline_mode = #tpu.pipeline_mode<synchronous>, transform_indices = @transform_4, window_bounds = array<i64: 128, 128>}, {pipeline_mode = #tpu.pipeline_mode<synchronous>, transform_indices = @transform_5, window_bounds = array<i64: 1, 128>}, {pipeline_mode = #tpu.pipeline_mode<synchronous>, transform_indices = @transform_6, window_bounds = array<i64: 128, 128>}, {pipeline_mode = #tpu.pipeline_mode<synchronous>, transform_indices = @transform_7, window_bounds = array<i64: 1, 128>}, {pipeline_mode = #tpu.pipeline_mode<synchronous>, transform_indices = @transform_8, window_bounds = array<i64: 128, 128>}, {pipeline_mode = #tpu.pipeline_mode<synchronous>, transform_indices = @transform_9, window_bounds = array<i64: 1, 128>}, {pipeline_mode = #tpu.pipeline_mode<synchronous>, transform_indices = @transform_10, window_bounds = array<i64: 64, 128>}, {pipeline_mode = #tpu.pipeline_mode<synchronous>, transform_indices = @transform_11, window_bounds = array<i64: 128, 128>}, {pipeline_mode = #tpu.pipeline_mode<synchronous>, transform_indices = @transform_12, window_bounds = array<i64: 1, 128>}, {pipeline_mode = #tpu.pipeline_mode<synchronous>, transform_indices = @transform_13, window_bounds = array<i64: 128, 128>}, {pipeline_mode = #tpu.pipeline_mode<synchronous>, transform_indices = @transform_14, window_bounds = array<i64: 1, 128>}, {pipeline_mode = #tpu.pipeline_mode<synchronous>, transform_indices = @transform_15, window_bounds = array<i64: 128, 256>}, {pipeline_mode = #tpu.pipeline_mode<synchronous>, transform_indices = @transform_16, window_bounds = array<i64: 1, 256>}, {transform_indices = @transform_17, window_bounds = array<i64: 32, 256>}]} {
    %c0 = arith.constant 0 : index
    %c0_0 = arith.constant 0 : index
    %0 = vector.load %arg1[%c0, %c0_0] : memref<32x256xf32, #tpu.memory_space<vmem>>, vector<32x256xf32>
    %1 = arith.truncf %0 : vector<32x256xf32> to vector<32x256xbf16>
    %c0_1 = arith.constant 0 : index
    %c0_2 = arith.constant 0 : index
    %2 = vector.load %arg3[%c0_1, %c0_2] : memref<256x256xbf16, #tpu.memory_space<vmem>>, vector<256x256xbf16>
    %cst = arith.constant dense<0.000000e+00> : vector<32x256xf32>
    %3 = tpu.matmul %1, %2, %cst {dimension_numbers = #tpu.dot_dimension_numbers<[1], [0], [0], [1], [0, 0, 1, 1], [], []>} : vector<32x256xbf16>, vector<256x256xbf16>, vector<32x256xf32> -> vector<32x256xf32>
    %c0_3 = arith.constant 0 : index
    %c0_4 = arith.constant 0 : index
    %4 = vector.load %arg4[%c0_3, %c0_4] : memref<1x256xf32, #tpu.memory_space<vmem>>, vector<1x256xf32>
    %5 = vector.broadcast %4 : vector<1x256xf32> to vector<32x256xf32>
    %6 = arith.addf %3, %5 : vector<32x256xf32>
    %cst_5 = arith.constant 0.000000e+00 : f32
    %7 = vector.broadcast %cst_5 : f32 to vector<32x256xf32>
    %8 = arith.maximumf %6, %7 : vector<32x256xf32>
    %9 = vector.extract_strided_slice %8 {offsets = [0, 0], sizes = [32, 128], strides = [1, 1]} : vector<32x256xf32> to vector<32x128xf32>
    %10 = arith.truncf %9 : vector<32x128xf32> to vector<32x128xbf16>
    %11 = vector.extract_strided_slice %8 {offsets = [0, 128], sizes = [32, 128], strides = [1, 1]} : vector<32x256xf32> to vector<32x128xf32>
    %12 = arith.truncf %11 : vector<32x128xf32> to vector<32x128xbf16>
    %c0_6 = arith.constant 0 : index
    %c0_7 = arith.constant 0 : index
    %13 = vector.load %arg5[%c0_6, %c0_7] : memref<128x128xbf16, #tpu.memory_space<vmem>>, vector<128x128xbf16>
    %cst_8 = arith.constant dense<0.000000e+00> : vector<32x128xf32>
    %14 = tpu.matmul %10, %13, %cst_8 {dimension_numbers = #tpu.dot_dimension_numbers<[1], [0], [0], [1], [0, 0, 1, 1], [], []>} : vector<32x128xbf16>, vector<128x128xbf16>, vector<32x128xf32> -> vector<32x128xf32>
    %c0_9 = arith.constant 0 : index
    %c0_10 = arith.constant 0 : index
    %15 = vector.load %arg6[%c0_9, %c0_10] : memref<1x128xf32, #tpu.memory_space<vmem>>, vector<1x128xf32>
    %16 = vector.broadcast %15 : vector<1x128xf32> to vector<32x128xf32>
    %17 = arith.addf %14, %16 : vector<32x128xf32>
    %c0_11 = arith.constant 0 : index
    %c0_12 = arith.constant 0 : index
    %18 = vector.load %arg7[%c0_11, %c0_12] : memref<128x128xbf16, #tpu.memory_space<vmem>>, vector<128x128xbf16>
    %cst_13 = arith.constant dense<0.000000e+00> : vector<32x128xf32>
    %19 = tpu.matmul %12, %18, %cst_13 {dimension_numbers = #tpu.dot_dimension_numbers<[1], [0], [0], [1], [0, 0, 1, 1], [], []>} : vector<32x128xbf16>, vector<128x128xbf16>, vector<32x128xf32> -> vector<32x128xf32>
    %c0_14 = arith.constant 0 : index
    %c0_15 = arith.constant 0 : index
    %20 = vector.load %arg8[%c0_14, %c0_15] : memref<1x128xf32, #tpu.memory_space<vmem>>, vector<1x128xf32>
    %21 = vector.broadcast %20 : vector<1x128xf32> to vector<32x128xf32>
    %22 = arith.addf %19, %21 : vector<32x128xf32>
    %cst_16 = arith.constant 0.000000e+00 : f32
    %23 = vector.broadcast %cst_16 : f32 to vector<32x128xf32>
    %24 = arith.maximumf %22, %23 : vector<32x128xf32>
    %25 = arith.truncf %24 : vector<32x128xf32> to vector<32x128xbf16>
    %c0_17 = arith.constant 0 : index
    %c0_18 = arith.constant 0 : index
    %26 = vector.load %arg9[%c0_17, %c0_18] : memref<128x128xbf16, #tpu.memory_space<vmem>>, vector<128x128xbf16>
    %cst_19 = arith.constant dense<0.000000e+00> : vector<32x128xf32>
    %27 = tpu.matmul %25, %26, %cst_19 {dimension_numbers = #tpu.dot_dimension_numbers<[1], [0], [0], [1], [0, 0, 1, 1], [], []>} : vector<32x128xbf16>, vector<128x128xbf16>, vector<32x128xf32> -> vector<32x128xf32>
    %c0_20 = arith.constant 0 : index
    %c0_21 = arith.constant 0 : index
    %28 = vector.load %arg10[%c0_20, %c0_21] : memref<1x128xf32, #tpu.memory_space<vmem>>, vector<1x128xf32>
    %29 = vector.broadcast %28 : vector<1x128xf32> to vector<32x128xf32>
    %30 = arith.addf %27, %29 : vector<32x128xf32>
    %31 = vector.extract_strided_slice %30 {offsets = [0, 0], sizes = [32, 64], strides = [1, 1]} : vector<32x128xf32> to vector<32x64xf32>
    %32 = vector.extract_strided_slice %30 {offsets = [0, 64], sizes = [32, 64], strides = [1, 1]} : vector<32x128xf32> to vector<32x64xf32>
    %c0_22 = arith.constant 0 : index
    %c0_23 = arith.constant 0 : index
    %33 = vector.load %arg2[%c0_22, %c0_23] : memref<32x128xf32, #tpu.memory_space<vmem>>, vector<32x128xf32>
    %34 = vector.extract_strided_slice %33 {offsets = [0, 0], sizes = [32, 64], strides = [1, 1]} : vector<32x128xf32> to vector<32x64xf32>
    %cst_24 = arith.constant 5.000000e-01 : f32
    %35 = vector.broadcast %cst_24 : f32 to vector<32x64xf32>
    %36 = arith.mulf %35, %32 : vector<32x64xf32>
    %37 = math.exp %36 : vector<32x64xf32>
    %38 = arith.mulf %34, %37 : vector<32x64xf32>
    %39 = arith.addf %38, %31 : vector<32x64xf32>
    %40 = arith.truncf %39 : vector<32x64xf32> to vector<32x64xbf16>
    %c0_25 = arith.constant 0 : index
    %c0_26 = arith.constant 0 : index
    %41 = vector.load %arg11[%c0_25, %c0_26] : memref<64x128xbf16, #tpu.memory_space<vmem>>, vector<64x128xbf16>
    %cst_27 = arith.constant dense<0.000000e+00> : vector<32x128xf32>
    %42 = tpu.matmul %40, %41, %cst_27 {dimension_numbers = #tpu.dot_dimension_numbers<[1], [0], [0], [1], [0, 0, 1, 1], [], []>} : vector<32x64xbf16>, vector<64x128xbf16>, vector<32x128xf32> -> vector<32x128xf32>
    %43 = arith.truncf %17 : vector<32x128xf32> to vector<32x128xbf16>
    %c0_28 = arith.constant 0 : index
    %c0_29 = arith.constant 0 : index
    %44 = vector.load %arg12[%c0_28, %c0_29] : memref<128x128xbf16, #tpu.memory_space<vmem>>, vector<128x128xbf16>
    %cst_30 = arith.constant dense<0.000000e+00> : vector<32x128xf32>
    %45 = tpu.matmul %43, %44, %cst_30 {dimension_numbers = #tpu.dot_dimension_numbers<[1], [0], [0], [1], [0, 0, 1, 1], [], []>} : vector<32x128xbf16>, vector<128x128xbf16>, vector<32x128xf32> -> vector<32x128xf32>
    %46 = arith.addf %42, %45 : vector<32x128xf32>
    %c0_31 = arith.constant 0 : index
    %c0_32 = arith.constant 0 : index
    %47 = vector.load %arg13[%c0_31, %c0_32] : memref<1x128xf32, #tpu.memory_space<vmem>>, vector<1x128xf32>
    %48 = vector.broadcast %47 : vector<1x128xf32> to vector<32x128xf32>
    %49 = arith.addf %46, %48 : vector<32x128xf32>
    %cst_33 = arith.constant 0.000000e+00 : f32
    %50 = vector.broadcast %cst_33 : f32 to vector<32x128xf32>
    %51 = arith.maximumf %49, %50 : vector<32x128xf32>
    %52 = arith.truncf %51 : vector<32x128xf32> to vector<32x128xbf16>
    %c0_34 = arith.constant 0 : index
    %c0_35 = arith.constant 0 : index
    %53 = vector.load %arg14[%c0_34, %c0_35] : memref<128x128xbf16, #tpu.memory_space<vmem>>, vector<128x128xbf16>
    %cst_36 = arith.constant dense<0.000000e+00> : vector<32x128xf32>
    %54 = tpu.matmul %52, %53, %cst_36 {dimension_numbers = #tpu.dot_dimension_numbers<[1], [0], [0], [1], [0, 0, 1, 1], [], []>} : vector<32x128xbf16>, vector<128x128xbf16>, vector<32x128xf32> -> vector<32x128xf32>
    %c0_37 = arith.constant 0 : index
    %c0_38 = arith.constant 0 : index
    %55 = vector.load %arg15[%c0_37, %c0_38] : memref<1x128xf32, #tpu.memory_space<vmem>>, vector<1x128xf32>
    %56 = vector.broadcast %55 : vector<1x128xf32> to vector<32x128xf32>
    %57 = arith.addf %54, %56 : vector<32x128xf32>
    %cst_39 = arith.constant 0.000000e+00 : f32
    %58 = vector.broadcast %cst_39 : f32 to vector<32x128xf32>
    %59 = arith.maximumf %57, %58 : vector<32x128xf32>
    %60 = arith.truncf %59 : vector<32x128xf32> to vector<32x128xbf16>
    %c0_40 = arith.constant 0 : index
    %c0_41 = arith.constant 0 : index
    %61 = vector.load %arg16[%c0_40, %c0_41] : memref<128x256xbf16, #tpu.memory_space<vmem>>, vector<128x256xbf16>
    %cst_42 = arith.constant dense<0.000000e+00> : vector<32x256xf32>
    %62 = tpu.matmul %60, %61, %cst_42 {dimension_numbers = #tpu.dot_dimension_numbers<[1], [0], [0], [1], [0, 0, 1, 1], [], []>} : vector<32x128xbf16>, vector<128x256xbf16>, vector<32x256xf32> -> vector<32x256xf32>
    %c0_43 = arith.constant 0 : index
    %c0_44 = arith.constant 0 : index
    %63 = vector.load %arg17[%c0_43, %c0_44] : memref<1x256xf32, #tpu.memory_space<vmem>>, vector<1x256xf32>
    %64 = vector.broadcast %63 : vector<1x256xf32> to vector<32x256xf32>
    %65 = arith.addf %62, %64 : vector<32x256xf32>
    %66 = arith.negf %65 : vector<32x256xf32>
    %67 = math.exp %66 : vector<32x256xf32>
    %cst_45 = arith.constant 1.000000e+00 : f32
    %68 = vector.broadcast %cst_45 : f32 to vector<32x256xf32>
    %69 = arith.addf %68, %67 : vector<32x256xf32>
    %70 = arith.divf %68, %69 : vector<32x256xf32>
    %c0_46 = arith.constant 0 : index
    %c0_47 = arith.constant 0 : index
    %71 = vector.load %arg18[%c0_46, %c0_47] : memref<32x256xf32, #tpu.memory_space<vmem>>, vector<32x256xf32>
    tpu.vector_store %arg18[%c0_46, %c0_47], %70 {strides = array<i32>} : memref<32x256xf32, #tpu.memory_space<vmem>>, vector<32x256xf32>,
    return
  }
  func.func @transform_0(%arg0: i32) -> (i32, i32) {
    %c0_i32 = arith.constant 0 : i32
    %c0_i32_0 = arith.constant 0 : i32
    return %arg0, %c0_i32 : i32, i32
  }
  func.func @transform_1(%arg0: i32) -> (i32, i32) {
    %c0_i32 = arith.constant 0 : i32
    %c0_i32_0 = arith.constant 0 : i32
    return %arg0, %c0_i32 : i32, i32
  }
  func.func @transform_2(%arg0: i32) -> (i32, i32) {
    %c0_i32 = arith.constant 0 : i32
    %c0_i32_0 = arith.constant 0 : i32
    %c0_i32_1 = arith.constant 0 : i32
    return %c0_i32, %c0_i32_0 : i32, i32
  }
  func.func @transform_3(%arg0: i32) -> (i32, i32) {
    %c0_i32 = arith.constant 0 : i32
    %c0_i32_0 = arith.constant 0 : i32
    %c0_i32_1 = arith.constant 0 : i32
    return %c0_i32, %c0_i32_0 : i32, i32
  }
  func.func @transform_4(%arg0: i32) -> (i32, i32) {
    %c0_i32 = arith.constant 0 : i32
    %c0_i32_0 = arith.constant 0 : i32
    %c0_i32_1 = arith.constant 0 : i32
    return %c0_i32, %c0_i32_0 : i32, i32
  }
  func.func @transform_5(%arg0: i32) -> (i32, i32) {
    %c0_i32 = arith.constant 0 : i32
    %c0_i32_0 = arith.constant 0 : i32
    %c0_i32_1 = arith.constant 0 : i32
    return %c0_i32, %c0_i32_0 : i32, i32
  }
  func.func @transform_6(%arg0: i32) -> (i32, i32) {
    %c0_i32 = arith.constant 0 : i32
    %c0_i32_0 = arith.constant 0 : i32
    %c0_i32_1 = arith.constant 0 : i32
    return %c0_i32, %c0_i32_0 : i32, i32
  }
  func.func @transform_7(%arg0: i32) -> (i32, i32) {
    %c0_i32 = arith.constant 0 : i32
    %c0_i32_0 = arith.constant 0 : i32
    %c0_i32_1 = arith.constant 0 : i32
    return %c0_i32, %c0_i32_0 : i32, i32
  }
  func.func @transform_8(%arg0: i32) -> (i32, i32) {
    %c0_i32 = arith.constant 0 : i32
    %c0_i32_0 = arith.constant 0 : i32
    %c0_i32_1 = arith.constant 0 : i32
    return %c0_i32, %c0_i32_0 : i32, i32
  }
  func.func @transform_9(%arg0: i32) -> (i32, i32) {
    %c0_i32 = arith.constant 0 : i32
    %c0_i32_0 = arith.constant 0 : i32
    %c0_i32_1 = arith.constant 0 : i32
    return %c0_i32, %c0_i32_0 : i32, i32
  }
  func.func @transform_10(%arg0: i32) -> (i32, i32) {
    %c0_i32 = arith.constant 0 : i32
    %c0_i32_0 = arith.constant 0 : i32
    %c0_i32_1 = arith.constant 0 : i32
    return %c0_i32, %c0_i32_0 : i32, i32
  }
  func.func @transform_11(%arg0: i32) -> (i32, i32) {
    %c0_i32 = arith.constant 0 : i32
    %c0_i32_0 = arith.constant 0 : i32
    %c0_i32_1 = arith.constant 0 : i32
    return %c0_i32, %c0_i32_0 : i32, i32
  }
  func.func @transform_12(%arg0: i32) -> (i32, i32) {
    %c0_i32 = arith.constant 0 : i32
    %c0_i32_0 = arith.constant 0 : i32
    %c0_i32_1 = arith.constant 0 : i32
    return %c0_i32, %c0_i32_0 : i32, i32
  }
  func.func @transform_13(%arg0: i32) -> (i32, i32) {
    %c0_i32 = arith.constant 0 : i32
    %c0_i32_0 = arith.constant 0 : i32
    %c0_i32_1 = arith.constant 0 : i32
    return %c0_i32, %c0_i32_0 : i32, i32
  }
  func.func @transform_14(%arg0: i32) -> (i32, i32) {
    %c0_i32 = arith.constant 0 : i32
    %c0_i32_0 = arith.constant 0 : i32
    %c0_i32_1 = arith.constant 0 : i32
    return %c0_i32, %c0_i32_0 : i32, i32
  }
  func.func @transform_15(%arg0: i32) -> (i32, i32) {
    %c0_i32 = arith.constant 0 : i32
    %c0_i32_0 = arith.constant 0 : i32
    %c0_i32_1 = arith.constant 0 : i32
    return %c0_i32, %c0_i32_0 : i32, i32
  }
  func.func @transform_16(%arg0: i32) -> (i32, i32) {
    %c0_i32 = arith.constant 0 : i32
    %c0_i32_0 = arith.constant 0 : i32
    %c0_i32_1 = arith.constant 0 : i32
    return %c0_i32, %c0_i32_0 : i32, i32
  }
  func.func @transform_17(%arg0: i32) -> (i32, i32) {
    %c0_i32 = arith.constant 0 : i32
    %c0_i32_0 = arith.constant 0 : i32
    return %arg0, %c0_i32 : i32, i32
  }
}

</mosaic_0001>

<bundles_post_ra>
// kernel: tpu_custom_call.1
= control target key start
LH: loop header
LB: loop body
LE: loop exit
PB: predicated region body
PF: predicated region fallthrough
CT: control target
= control target key end

     0   :  { %s3849_s0 = inlined_call_operand.hbm [shape: f32[64,256], index: 0, kind: input, shape index: {}]   ;;  %s3850_s1 = inlined_call_operand.hbm [shape: f32[64,128], index: 1, kind: input, shape index: {}]   ;;  %s3851_s2 = inlined_call_operand.hbm [shape: bf16[256,256], index: 2, kind: input, shape index: {}]   ;;  %s3852_s3 = inlined_call_operand.vmem [shape: f32[1,256], index: 3, kind: input, shape index: {}]   ;;  %s3853_s4 = inlined_call_operand.hbm [shape: bf16[128,128], index: 4, kind: input, shape index: {}]   ;;  %s3854_s5 = inlined_call_operand.vmem [shape: f32[1,128], index: 5, kind: input, shape index: {}]   ;;  %s3855_s6 = inlined_call_operand.hbm [shape: bf16[128,128], index: 6, kind: input, shape index: {}]   ;;  %s3856_s7 = inlined_call_operand.hbm [shape: f32[1,128], index: 7, kind: input, shape index: {}]   ;;  %s3857_s8 = inlined_call_operand.hbm [shape: bf16[128,128], index: 8, kind: input, shape index: {}]   ;;  %s3858_s9 = inlined_call_operand.hbm [shape: f32[1,128], index: 9, kind: input, shape index: {}]   ;;  %s3859_s10 = inlined_call_operand.vmem [shape: bf16[64,128], index: 10, kind: input, shape index: {}]   ;;  %s3860_s11 = inlined_call_operand.hbm [shape: bf16[128,128], index: 11, kind: input, shape index: {}]   ;;  %s3861_s12 = inlined_call_operand.vmem [shape: f32[1,128], index: 12, kind: input, shape index: {}]   ;;  %s3862_s13 = inlined_call_operand.hbm [shape: bf16[128,128], index: 13, kind: input, shape index: {}]   ;;  %s3863_s14 = inlined_call_operand.vmem [shape: f32[1,128], index: 14, kind: input, shape index: {}]   ;;  %s3864_s15 = inlined_call_operand.hbm [shape: bf16[128,256], index: 15, kind: input, shape index: {}]   ;;  %s3865_s16 = inlined_call_operand.vmem [shape: f32[1,256], index: 16, kind: input, shape index: {}]   ;;  %s3866_s17 = inlined_call_operand.hbm [shape: f32[64,256], index: 17, kind: output, shape index: {}]  }
   0x1   :  { %3881 = sst [smem:[#allocation29_spill]] %s3849_s0 }
   0x2   :  { %3882 = sst [smem:[#allocation30_spill]] %s3850_s1 }
   0x3   :  { %3883 = sst [smem:[#allocation31_spill]] %s3851_s2 }
   0x4   :  { %3884 = sst [smem:[#allocation32_spill]] %s3852_s3 }
   0x5   :  { %3885 = sst [smem:[#allocation33_spill]] %s3853_s4 }
   0x6   :  { %3886 = sst [smem:[#allocation34_spill]] %s3854_s5 }
   0x7   :  { %3887 = sst [smem:[#allocation35_spill]] %s3855_s6 }
   0x8   :  { %3888 = sst [smem:[#allocation36_spill]] %s3856_s7 }
   0x9   :  { %3889 = sst [smem:[#allocation37_spill]] %s3857_s8 }
   0xa   :  { %3890 = sst [smem:[#allocation38_spill]] %s3858_s9 }
   0xb   :  { %3891 = sst [smem:[#allocation39_spill]] %s3859_s10 }
   0xc   :  { %3892 = sst [smem:[#allocation40_spill]] %s3860_s11 }
   0xd   :  { %3893 = sst [smem:[#allocation41_spill]] %s3861_s12 }
   0xe   :  { %3894 = sst [smem:[#allocation42_spill]] %s3862_s13 }
   0xf   :  { %3895 = sst [smem:[#allocation43_spill]] %s3863_s14 }
  0x10   :  { %3896 = sst [smem:[#allocation44_spill]] %s3864_s15 }
  0x11   :  { %3897 = sst [smem:[#allocation45_spill]] %s3865_s16 }
  0x12   :  { %3898 = sst [smem:[#allocation46_spill]] %s3866_s17 }
  0x13   :  { %22 = vsyncpa [#allocation3], 0 }
  0x14   :  { %24 = vsyncpa [#allocation3 + $0x1], 0 }
  0x15   :  { %25 = vsyncpa [#allocation6], 0 }
  0x16   :  { %27 = vsyncpa [#allocation6 + $0x1], 0 }
  0x17   :  { %28 = vsyncpa [#allocation9], 0 }
  0x18   :  { %29 = vsyncpa [#allocation12], 0 }
  0x19   :  { %30 = vsyncpa [#allocation15], 0 }
  0x1a   :  { %31 = vsyncpa [#allocation18], 0 }
  0x1b   :  { %32 = vsyncpa [#allocation4], 0 }
  0x1c   :  { %34 = vsyncpa [#allocation4 + $0x1], 0  ;;  %s3332_s24 = smov 0   ;;  %s3334_s25 = smov 0  }
  0x1d   :  { %s3336_s26 = smov 0   ;;  %s3338_s27 = smov 0  }
  0x1e LB: > { %s3220_s28 = smov [#allocation7]   ;;  %s3353_s0 = sadd.s32 4294967295, %s3218_s27   ;;  %s3218_s27 = sphi %s3338_s27, %s3946_s27   ;;  %s3214_s26 = sphi %s3336_s26, %s3945_s26   ;;  %s3210_s25 = sphi %s3334_s25, %s3944_s25   ;;  %s3206_s24 = sphi %s3332_s24, %s3943_s24  }
  0x1f   : > { %s450_s29 = sshll.u32 %s3220_s28, 4  ;;  %p2187_p0 = scmp.ge.s32.totalorder %s3218_s27, 1  ;;  %s3358_s29 = int_to_ptr.vmem [resolvable:$true] %s450_s29 }
  0x20   : > { %p3873_p1 = scmp.eq.s32.totalorder %s3353_s0, 0  ;;  %p438_p2 = scmp.lt.s32.totalorder %s3218_s27, 3 }
  0x21   : > { %s3221_s18 = smov [#allocation8]   ;;  %s3222_s20 = smov [#allocation11]  }
  0x22   : > { %p3360_p3 = pnand %p2187_p0, %p438_p2  ;;  %s466_s19 = sshll.u32 %s3221_s18, 4  ;;  %s3373_s19 = int_to_ptr.vmem [resolvable:$true] %s466_s19 }
  0x23   : > { %s3375_s21 = sshll.u32 %s3222_s20, 4  ;;  %s3901_s2 = sld [smem:[#allocation31_spill]]  ;;  %s497_s21 = int_to_ptr.vmem [resolvable:$true] %s3375_s21 }
  0x24   : > { %s3899_s30 = scalar_select %p3360_p3, 1, 0 }
  0x25   : > { %p2550_p5 = pneg %p3360_p3 }
  0x27   : > { %p3369_p6 = pnand %p2550_p5, %p3873_p1 }
  0x29   : > { %s2816_s28 = scalar_lea.hbm %s3901_s2, 4096  ;;  %p3385_p8 = pneg %p3369_p6 }
  0x2a   : > { %p2817_p7 = scmp.ne.s32.totalorder %s3901_s2, %s2816_s28  ;;  %p2823_p11 = scmp.lt.u32.totalorder %s2816_s28, %s3901_s2 }
  0x2c   : > { %p2819_p9 = pnand %p3385_p8, %p2817_p7 }
  0x2e   : > { %p2820_p10 = pneg %p2819_p9 }
  0x30   : > { %p2825_p12 = pnand %p2823_p11, %p2820_p10 }
  0x32   : > { %2828 = shalt.err (!%p2825_p12)
}
  0x33   : > { %s2829_s16 = scalar_lea.vmem %s3358_s29, 4096  ;;  %p2837_p5 = scmp.lt.s32.totalorder %s3358_s29, %s3358_s29 }
  0x34   : > { %p2830_p13 = scmp.ne.s32.totalorder %s3358_s29, %s2829_s16  ;;  %p2838_p4 = scmp.lt.s32.totalorder %s2829_s16, %s2829_s16 }
  0x36   : > { %p2832_p0 = pnand %p2830_p13, %p3385_p8  ;;  %p2839_p7 = por %p2838_p4, %p2837_p5 }
  0x38   : > { %p2833_p2 = pneg %p2832_p0 }
  0x3a   : > { %p2840_p9 = pnand %p2839_p7, %p2833_p2 }
  0x3c   : > { %2843 = shalt.err (!%p2840_p9)
}
  0x3d   : > { %s3871_s17 = smov 128   ;;  %s3875_s14 = smov 8  }
  0x3e   : > { %2553 = dma.hbm_to_vmem [thread:$0]  (!%p3369_p6), %s3901_s2, 4096, %s3358_s29, [#allocation6], %s3871_s17, %s3871_s17, %s3875_s14  }
  0x3f   : > { %s3903_s4 = sld [smem:[#allocation33_spill]] }
  0x45   : > { %s2844_s16 = scalar_lea.hbm %s3903_s4, 1024 }
  0x46   : > { %p2845_p4 = scmp.ne.s32.totalorder %s3903_s4, %s2844_s16  ;;  %p2851_p12 = scmp.lt.u32.totalorder %s2844_s16, %s3903_s4 }
  0x48   : > { %p2847_p10 = pnand %p2845_p4, %p3385_p8 }
  0x4a   : > { %p2848_p11 = pneg %p2847_p10 }
  0x4c   : > { %p2853_p13 = pnand %p2851_p12, %p2848_p11 }
  0x4e   : > { %2856 = shalt.err (!%p2853_p13)
}
  0x4f   : > { %s2857_s29 = scalar_lea.vmem %s3373_s19, 1024  ;;  %p2865_p7 = scmp.lt.s32.totalorder %s3373_s19, %s3373_s19 }
  0x50   : > { %p2858_p0 = scmp.ne.s32.totalorder %s3373_s19, %s2857_s29  ;;  %p2866_p9 = scmp.lt.s32.totalorder %s2857_s29, %s2857_s29 }
  0x52   : > { %p2860_p2 = pnand %p2858_p0, %p3385_p8  ;;  %p2867_p4 = por %p2866_p9, %p2865_p7 }
  0x54   : > { %p2861_p5 = pneg %p2860_p2 }
  0x56   : > { %p2868_p10 = pnand %p2867_p4, %p2861_p5 }
  0x58   : > { %2871 = shalt.err (!%p2868_p10)
}
  0x59   : > { %s3877_s10 = smov 64   ;;  %s3226_s3 = smov 4  }
  0x5a   : > { %2556 = dma.hbm_to_vmem [thread:$0]  (!%p3369_p6), %s3903_s4, 1024, %s3373_s19, [#allocation9], %s3877_s10, %s3877_s10, %s3226_s3  }
  0x5b   : > { %s3904_s7 = sld [smem:[#allocation36_spill]] }
  0x61   : > { %s2872_s28 = scalar_lea.hbm %s3904_s7, 16 }
  0x62   : > { %p2873_p11 = scmp.ne.s32.totalorder %s3904_s7, %s2872_s28  ;;  %p2879_p0 = scmp.lt.u32.totalorder %s2872_s28, %s3904_s7 }
  0x64   : > { %p2875_p12 = pnand %p2873_p11, %p3385_p8 }
  0x66   : > { %p2876_p13 = pneg %p2875_p12 }
  0x68   : > { %p2881_p2 = pnand %p2879_p0, %p2876_p13 }
  0x6a   : > { %2884 = shalt.err (!%p2881_p2)
}
  0x6b   : > { %s2885_s5 = scalar_lea.vmem %s497_s21, 16  ;;  %s2892_s19 = scalar_lea.vmem %s497_s21, 32 }
  0x6c   : > { %p2886_p5 = scmp.ne.s32.totalorder %s497_s21, %s2885_s5  ;;  %p2893_p4 = scmp.lt.s32.totalorder %s497_s21, %s497_s21 }
  0x6d   : > { %p2894_p10 = scmp.lt.s32.totalorder %s2892_s19, %s2885_s5 }
  0x6e   : > { %p2888_p7 = pnand %p2886_p5, %p3385_p8 }
  0x6f   : > { %p2895_p1 = por %p2894_p10, %p2893_p4 }
  0x70   : > { %p2889_p9 = pneg %p2888_p7 }
  0x72   : > { %p2896_p3 = pnand %p2895_p1, %p2889_p9 }
  0x74   : > { %2899 = shalt.err (!%p2896_p3)
}
  0x75   : > { %2562 = dma.hbm_to_vmem [thread:$0]  (!%p3369_p6), %s3904_s7, 16, %s497_s21, [#allocation12]  }
  0x76   : > { %s3227_s17 = smov [#allocation14]   ;;  %s3228_s28 = smov [#allocation17]  }
  0x77   : > { %s520_s23 = sshll.u32 %s3227_s17, 4  ;;  %s549_s20 = sshll.u32 %s3228_s28, 4  ;;  %s521_s23 = int_to_ptr.vmem [resolvable:$true] %s520_s23  ;;  %s550_s20 = int_to_ptr.vmem [resolvable:$true] %s549_s20 }
  0x78   : > { %s3905_s9 = sld [smem:[#allocation38_spill]] }
  0x7e   : > { %s2900_s14 = scalar_lea.hbm %s3905_s9, 16 }
  0x7f   : > { %p2901_p1 = scmp.ne.s32.totalorder %s3905_s9, %s2900_s14  ;;  %p2907_p12 = scmp.lt.u32.totalorder %s2900_s14, %s3905_s9 }
  0x81   : > { %p2903_p3 = pnand %p2901_p1, %p3385_p8 }
  0x83   : > { %p2904_p11 = pneg %p2903_p3 }
  0x85   : > { %p2909_p13 = pnand %p2907_p12, %p2904_p11 }
  0x87   : > { %2912 = shalt.err (!%p2909_p13)
}
  0x88   : > { %s2913_s21 = scalar_lea.vmem %s521_s23, 16  ;;  %s2920_s22 = scalar_lea.vmem %s521_s23, 32 }
  0x89   : > { %p2914_p0 = scmp.ne.s32.totalorder %s521_s23, %s2913_s21  ;;  %p2921_p7 = scmp.lt.s32.totalorder %s521_s23, %s521_s23 }
  0x8a   : > { %p2922_p9 = scmp.lt.s32.totalorder %s2920_s22, %s2913_s21 }
  0x8b   : > { %p2916_p2 = pnand %p2914_p0, %p3385_p8 }
  0x8c   : > { %p2923_p4 = por %p2922_p9, %p2921_p7 }
  0x8d   : > { %p2917_p5 = pneg %p2916_p2 }
  0x8f   : > { %p2924_p10 = pnand %p2923_p4, %p2917_p5 }
  0x91   : > { %2927 = shalt.err (!%p2924_p10)
}
  0x92   : > { %2568 = dma.hbm_to_vmem [thread:$0]  (!%p3369_p6), %s3905_s9, 16, %s521_s23, [#allocation15]  }
  0x93   : > { %s3906_s13 = sld [smem:[#allocation42_spill]] }
  0x99   : > { %s2928_s16 = scalar_lea.hbm %s3906_s13, 1024 }
  0x9a   : > { %p2929_p1 = scmp.ne.s32.totalorder %s3906_s13, %s2928_s16  ;;  %p2935_p12 = scmp.lt.u32.totalorder %s2928_s16, %s3906_s13 }
  0x9c   : > { %p2931_p3 = pnand %p2929_p1, %p3385_p8 }
  0x9e   : > { %p2932_p11 = pneg %p2931_p3 }
  0xa0   : > { %p2937_p13 = pnand %p2935_p12, %p2932_p11 }
  0xa2   : > { %2940 = shalt.err (!%p2937_p13)
}
  0xa3   : > { %s2941_s21 = scalar_lea.vmem %s550_s20, 1024  ;;  %p2949_p7 = scmp.lt.s32.totalorder %s550_s20, %s550_s20 }
  0xa4   : > { %p2942_p0 = scmp.ne.s32.totalorder %s550_s20, %s2941_s21  ;;  %p2950_p9 = scmp.lt.s32.totalorder %s2941_s21, %s2941_s21 }
  0xa6   : > { %p2944_p2 = pnand %p2942_p0, %p3385_p8  ;;  %p2951_p4 = por %p2950_p9, %p2949_p7 }
  0xa8   : > { %p2945_p5 = pneg %p2944_p2 }
  0xaa   : > { %p2952_p10 = pnand %p2951_p4, %p2945_p5 }
  0xac   : > { %2955 = shalt.err (!%p2952_p10)
}
  0xad   : > { %s3907_s23 = smov 64   ;;  %s3229_s28 = smov [#allocation10]  }
  0xae   : > { %2574 = dma.hbm_to_vmem [thread:$0]  (!%p3369_p6), %s3906_s13, 1024, %s550_s20, [#allocation18], %s3907_s23, %s3907_s23, %s3226_s3  }
  0xaf   : > { %s482_s14 = sshll.u32 %s3229_s28, 4  ;;  %s3230_s10 = smov [#allocation13]   ;;  %s483_s14 = int_to_ptr.vmem [resolvable:$true] %s482_s14 }
  0xb0   : > { %s506_s16 = sshll.u32 %s3230_s10, 4  ;;  %s3908_s6 = sld [smem:[#allocation35_spill]]  ;;  %s507_s16 = int_to_ptr.vmem [resolvable:$true] %s506_s16 }
  0xb6   : > { %s2956_s19 = scalar_lea.hbm %s3908_s6, 1024 }
  0xb7   : > { %p2957_p1 = scmp.ne.s32.totalorder %s3908_s6, %s2956_s19  ;;  %p2963_p12 = scmp.lt.u32.totalorder %s2956_s19, %s3908_s6 }
  0xb9   : > { %p2959_p3 = pnand %p2957_p1, %p3385_p8 }
  0xbb   : > { %p2960_p11 = pneg %p2959_p3 }
  0xbd   : > { %p2965_p13 = pnand %p2963_p12, %p2960_p11 }
  0xbf   : > { %2968 = shalt.err (!%p2965_p13)
}
  0xc0   : > { %s2969_s20 = scalar_lea.vmem %s483_s14, 1024  ;;  %p2977_p7 = scmp.lt.s32.totalorder %s483_s14, %s483_s14 }
  0xc1   : > { %p2970_p0 = scmp.ne.s32.totalorder %s483_s14, %s2969_s20  ;;  %p2978_p9 = scmp.lt.s32.totalorder %s2969_s20, %s2969_s20 }
  0xc3   : > { %p2972_p2 = pnand %p2970_p0, %p3385_p8  ;;  %p2979_p4 = por %p2978_p9, %p2977_p7 }
  0xc5   : > { %p2973_p5 = pneg %p2972_p2 }
  0xc7   : > { %p2980_p10 = pnand %p2979_p4, %p2973_p5 }
  0xc9   : > { %2983 = shalt.err (!%p2980_p10)
}
  0xca   : > { %2559 = dma.hbm_to_vmem [thread:$0]  (!%p3369_p6), %s3908_s6, 1024, %s483_s14, [#allocation9], %s3907_s23, %s3907_s23, %s3226_s3  }
  0xcb   : > { %s3909_s8 = sld [smem:[#allocation37_spill]] }
  0xd1   : > { %s2984_s29 = scalar_lea.hbm %s3909_s8, 1024 }
  0xd2   : > { %p2985_p1 = scmp.ne.s32.totalorder %s3909_s8, %s2984_s29  ;;  %p2991_p12 = scmp.lt.u32.totalorder %s2984_s29, %s3909_s8 }
  0xd4   : > { %p2987_p3 = pnand %p2985_p1, %p3385_p8 }
  0xd6   : > { %p2988_p11 = pneg %p2987_p3 }
  0xd8   : > { %p2993_p13 = pnand %p2991_p12, %p2988_p11 }
  0xda   : > { %2996 = shalt.err (!%p2993_p13)
}
  0xdb   : > { %s2997_s22 = scalar_lea.vmem %s507_s16, 1024  ;;  %p3005_p7 = scmp.lt.s32.totalorder %s507_s16, %s507_s16 }
  0xdc   : > { %p2998_p0 = scmp.ne.s32.totalorder %s507_s16, %s2997_s22  ;;  %p3006_p9 = scmp.lt.s32.totalorder %s2997_s22, %s2997_s22 }
  0xde   : > { %p3000_p2 = pnand %p2998_p0, %p3385_p8  ;;  %p3007_p4 = por %p3006_p9, %p3005_p7 }
  0xe0   : > { %p3001_p5 = pneg %p3000_p2 }
  0xe2   : > { %p3008_p10 = pnand %p3007_p4, %p3001_p5 }
  0xe4   : > { %3011 = shalt.err (!%p3008_p10)
}
  0xe5   : > { %2565 = dma.hbm_to_vmem [thread:$0]  (!%p3369_p6), %s3909_s8, 1024, %s507_s16, [#allocation12], %s3907_s23, %s3907_s23, %s3226_s3  }
  0xe6   : > { %s3231_s2 = smov [#allocation16]   ;;  %s3232_s28 = smov [#allocation19]  }
  0xe7   : > { %s533_s17 = sshll.u32 %s3231_s2, 4  ;;  %s565_s10 = sshll.u32 %s3232_s28, 4  ;;  %s534_s17 = int_to_ptr.vmem [resolvable:$true] %s533_s17  ;;  %s566_s10 = int_to_ptr.vmem [resolvable:$true] %s565_s10 }
  0xe8   : > { %s3910_s11 = sld [smem:[#allocation40_spill]] }
  0xee   : > { %s3012_s19 = scalar_lea.hbm %s3910_s11, 1024 }
  0xef   : > { %p3013_p1 = scmp.ne.s32.totalorder %s3910_s11, %s3012_s19  ;;  %p3019_p12 = scmp.lt.u32.totalorder %s3012_s19, %s3910_s11 }
  0xf1   : > { %p3015_p3 = pnand %p3013_p1, %p3385_p8 }
  0xf3   : > { %p3016_p11 = pneg %p3015_p3 }
  0xf5   : > { %p3021_p13 = pnand %p3019_p12, %p3016_p11 }
  0xf7   : > { %3024 = shalt.err (!%p3021_p13)
}
  0xf8   : > { %s3025_s16 = scalar_lea.vmem %s534_s17, 1024  ;;  %p3033_p7 = scmp.lt.s32.totalorder %s534_s17, %s534_s17 }
  0xf9   : > { %p3026_p0 = scmp.ne.s32.totalorder %s534_s17, %s3025_s16  ;;  %p3034_p9 = scmp.lt.s32.totalorder %s3025_s16, %s3025_s16 }
  0xfb   : > { %p3028_p2 = pnand %p3026_p0, %p3385_p8  ;;  %p3035_p4 = por %p3034_p9, %p3033_p7 }
  0xfd   : > { %p3029_p5 = pneg %p3028_p2 }
  0xff   : > { %p3036_p10 = pnand %p3035_p4, %p3029_p5 }
 0x101   : > { %3039 = shalt.err (!%p3036_p10)
}
 0x102   : > { %2571 = dma.hbm_to_vmem [thread:$0]  (!%p3369_p6), %s3910_s11, 1024, %s534_s17, [#allocation15], %s3907_s23, %s3907_s23, %s3226_s3  }
 0x103   : > { %s3911_s15 = sld [smem:[#allocation44_spill]] }
 0x109   : > { %s3040_s5 = scalar_lea.hbm %s3911_s15, 2048 }
 0x10a   : > { %p3041_p1 = scmp.ne.s32.totalorder %s3911_s15, %s3040_s5  ;;  %p3047_p12 = scmp.lt.u32.totalorder %s3040_s5, %s3911_s15 }
 0x10c   : > { %p3043_p3 = pnand %p3041_p1, %p3385_p8 }
 0x10e   : > { %p3044_p11 = pneg %p3043_p3 }
 0x110   : > { %p3049_p13 = pnand %p3047_p12, %p3044_p11 }
 0x112   : > { %3052 = shalt.err (!%p3049_p13)
}
 0x113   : > { %s3053_s14 = scalar_lea.vmem %s566_s10, 2048  ;;  %p3061_p7 = scmp.lt.s32.totalorder %s566_s10, %s566_s10 }
 0x114   : > { %p3054_p0 = scmp.ne.s32.totalorder %s566_s10, %s3053_s14  ;;  %p3062_p9 = scmp.lt.s32.totalorder %s3053_s14, %s3053_s14 }
 0x116   : > { %p3056_p2 = pnand %p3054_p0, %p3385_p8  ;;  %p3063_p4 = por %p3062_p9, %p3061_p7 }
 0x118   : > { %p3057_p5 = pneg %p3056_p2 }
 0x11a   : > { %p3064_p10 = pnand %p3063_p4, %p3057_p5 }
 0x11c   : > { %3067 = shalt.err (!%p3064_p10)
}
 0x11d   : > { %s3912_s3 = smov 8   ;;  %s3913_s23 = smov 128  }
 0x11e   : > { %2577 = dma.hbm_to_vmem [thread:$0]  (!%p3369_p6), %s3911_s15, 2048, %s566_s10, [#allocation18], %s3913_s23, %s3913_s23, %s3912_s3  }
 0x11f   : > { %s2186_s1 = sadd.s32 4294967294, %s3218_s27   ;;  %s3579_s18 = sadd.s32 1, %s3218_s27  }
 0x120   : > { %s47_s20 = sadd.s32 1, %s3214_s26  ;;  %s44_s2 = ssub.s32 %s3218_s27, %s3579_s18 }
 0x121   : > { %p54_p8 = scmp.ne.s32.totalorder %s3214_s26, %s3210_s25  ;;  %p45_p1 = scmp.eq.s32.totalorder %s44_s2, 0 }
 0x122   : > { %p55_p3 = scmp.eq.s32.totalorder %s3218_s27, 0  ;;  %p60_p11 = scmp.ne.s32.totalorder %s3210_s25, %s3206_s24 }
 0x123   : > { %p425_p12 = scmp.eq.s32.totalorder %s3353_s0, 1  ;;  %p3914_p0 = scmp.eq.s32.totalorder %s3353_s0, 0 }
 0x124   : > { %s3591_s28 = scalar_select %p45_p1, %s3214_s26, %s47_s20  }
 0x125   : > { %p56_p13 = por %p55_p3, %p54_p8  ;;  %p3595_p2 = por %p3914_p0, %p60_p11 }
 0x126   : > { %p3599_p6 = por %p425_p12, %p54_p8  ;;  %p431_p5 = scmp.eq.s32.totalorder %s2186_s1, 1 }
 0x127   : > { %p2598_p7 = scmp.lt.s32.totalorder %s3218_s27, 2  ;;  %s3605_s5 = sand.u32 1, %s3214_s26  }
 0x128   : > { %s3916_s10 = scalar_select %p3599_p6, 1, 0 }
 0x129   : > { %p3607_p9 = por %p431_p5, %p60_p11  ;;  %s2198_s12 = sshll.u32 %s3605_s5, 6 }
 0x12a   : > { %s2332_s21 = sshll.u32 %s3218_s27, 10  ;;  %s3918_s17 = sld [smem:[#allocation29_spill]] }
 0x12b   : > { %s3917_s19 = scalar_select %p3607_p9, 1, 0 }
 0x12c   : > { %s586_s1 = scalar_lea.vmem [#allocation2], %s2198_s12  ;;  %p3618_p4 = pnand %p2598_p7, %p56_p13 }
 0x12d   : > { %s594_s20 = sshll.u32 %s586_s1, 4  ;;  %s3622_s20 = int_to_ptr.vmem [resolvable:$true] %s594_s20 }
 0x12e   : > { %p3070_p8 = pneg %p3618_p4 }
 0x130   : > { %s3616_s16 = scalar_lea.hbm %s3918_s17, %s2332_s21  ;;  %s3073_s22 = scalar_lea.hbm %s3918_s17, 2048 }
 0x131   : > { %s3068_s6 = scalar_lea.hbm %s3616_s16, 1024  ;;  %p3074_p11 = scmp.lt.u32.totalorder %s3616_s16, %s3918_s17 }
 0x132   : > { %p3069_p10 = scmp.ne.s32.totalorder %s3616_s16, %s3068_s6  ;;  %p3075_p12 = scmp.lt.u32.totalorder %s3073_s22, %s3068_s6 }
 0x133   : > { %p3077_p0 = scmp.lt.u32.totalorder %s3068_s6, %s3616_s16 }
 0x134   : > { %p3071_p1 = pnand %p3070_p8, %p3069_p10  ;;  %p3076_p13 = por %p3075_p12, %p3074_p11 }
 0x136   : > { %p3072_p3 = pneg %p3071_p1  ;;  %p3078_p5 = por %p3077_p0, %p3076_p13 }
 0x138   : > { %p3079_p7 = pnand %p3078_p5, %p3072_p3 }
 0x13a   : > { %3082 = shalt.err (!%p3079_p7)
}
 0x13b   : > { %s3083_s4 = scalar_lea.vmem %s3622_s20, 1024  ;;  %s3233_s21 = smov [#allocation2]  }
 0x13c   : > { %p3084_p10 = scmp.ne.s32.totalorder %s3622_s20, %s3083_s4  ;;  %s3088_s12 = sshll.u32 %s3233_s21, 4  ;;  %s3089_s12 = int_to_ptr.vmem [resolvable:$false] %s3088_s12 }
 0x13d   : > { %s3090_s14 = scalar_lea.vmem %s3089_s12, 2048  ;;  %p3091_p6 = scmp.lt.s32.totalorder %s3622_s20, %s3089_s12 }
 0x13e   : > { %p3086_p1 = pnand %p3084_p10, %p3070_p8  ;;  %p3092_p11 = scmp.lt.s32.totalorder %s3090_s14, %s3083_s4 }
 0x140   : > { %p3087_p9 = pneg %p3086_p1  ;;  %p3093_p12 = por %p3092_p11, %p3091_p6 }
 0x142   : > { %p3094_p13 = pnand %p3093_p12, %p3087_p9 }
 0x144   : > { %3097 = shalt.err (!%p3094_p13)
}
 0x145   : > { %s3234_s6 = smov 256   ;;  %s3235_s22 = smov 16  }
 0x146   : > { %s3920_s1 = scalar_lea.sflag [#allocation3], %s3605_s5  ;;  %s604_s21 = sand.u32 1, %s3218_s27  }
 0x147   : > { %2581 = dma.hbm_to_vmem [thread:$0]  (!%p3618_p4), %s3616_s16, 1024, %s3622_s20, %s3920_s1, %s3234_s6, %s3234_s6, %s3235_s22  }
 0x148   : > { %s2202_s7 = sshll.u32 %s3605_s5, 5  ;;  %s2333_s12 = sshll.u32 %s3218_s27, 9 }
 0x149   : > { %s608_s4 = scalar_lea.vmem [#allocation5], %s2202_s7  ;;  %s3921_s11 = sld [smem:[#allocation30_spill]] }
 0x14a   : > { %s615_s14 = sshll.u32 %s608_s4, 4  ;;  %s3662_s15 = scalar_lea.sflag [#allocation6], %s604_s21  ;;  %s3660_s14 = int_to_ptr.vmem [resolvable:$true] %s615_s14 }
 0x14f   : > { %s3658_s13 = scalar_lea.hbm %s3921_s11, %s2333_s12  ;;  %s3103_s8 = scalar_lea.hbm %s3921_s11, 1024 }
 0x150   : > { %s3098_s17 = scalar_lea.hbm %s3658_s13, 512  ;;  %p3104_p0 = scmp.lt.u32.totalorder %s3658_s13, %s3921_s11 }
 0x151   : > { %p3099_p6 = scmp.ne.s32.totalorder %s3658_s13, %s3098_s17  ;;  %p3105_p5 = scmp.lt.u32.totalorder %s3103_s8, %s3098_s17 }
 0x152   : > { %p3107_p10 = scmp.lt.u32.totalorder %s3098_s17, %s3658_s13 }
 0x153   : > { %p3101_p9 = pnand %p3099_p6, %p3070_p8  ;;  %p3106_p7 = por %p3105_p5, %p3104_p0 }
 0x155   : > { %p3102_p3 = pneg %p3101_p9  ;;  %p3108_p1 = por %p3107_p10, %p3106_p7 }
 0x157   : > { %p3109_p11 = pnand %p3108_p1, %p3102_p3 }
 0x159   : > { %3112 = shalt.err (!%p3109_p11)
}
 0x15a   : > { %s3113_s20 = scalar_lea.vmem %s3660_s14, 512  ;;  %s3236_s6 = smov [#allocation5]  }
 0x15b   : > { %p3114_p12 = scmp.ne.s32.totalorder %s3660_s14, %s3113_s20  ;;  %s3118_s22 = sshll.u32 %s3236_s6, 4  ;;  %s3119_s22 = int_to_ptr.vmem [resolvable:$false] %s3118_s22 }
 0x15c   : > { %s3120_s1 = scalar_lea.vmem %s3119_s22, 1024  ;;  %p3121_p9 = scmp.lt.s32.totalorder %s3660_s14, %s3119_s22 }
 0x15d   : > { %p3116_p13 = pnand %p3114_p12, %p3070_p8  ;;  %p3122_p0 = scmp.lt.s32.totalorder %s3120_s1, %s3113_s20 }
 0x15f   : > { %p3117_p6 = pneg %p3116_p13  ;;  %p3123_p5 = por %p3122_p0, %p3121_p9 }
 0x161   : > { %p3124_p7 = pnand %p3123_p5, %p3117_p6 }
 0x163   : > { %3127 = shalt.err (!%p3124_p7)
}
 0x164   : > { %2584 = dma.hbm_to_vmem [thread:$0]  (!%p3618_p4), %s3658_s13, 512, %s3660_s14, %s3662_s15, %s3913_s23, %s3913_s23, %s3912_s3  }
 0x165   : > { %p3922_p8 = scmp.ne.s32.totalorder %s3899_s30, 0 }
 0x166   : > { %s3694_s17 = sand.u32 (!%p3922_p8), 1, %s3210_s25  }
 0x167   : > { %627 = sbr.rel (%p3922_p8) target bundleno = 2000 (0x7d0), region = 88  ;;  %s2206_s21 = sshll.u32 (!%p3922_p8), %s3694_s17, 6 }
 0x168   : > { %s630_s12 = scalar_lea.sflag (!%p3922_p8), [#allocation3], %s3694_s17  ;;  %s3700_s2 = scalar_lea.vmem (!%p3922_p8), [#allocation2], %s2206_s21 }
 0x16e   : > { %3173 = dma.done.wait (%p3595_p2), %s630_s12, 1024  }
 0x16f   : > { %3175 = vsyncadd (%p3595_p2), %s630_s12, 4294966272  ;;  %s638_s13 = sand.u32 1, %s3353_s0   ;;  %s2207_s15 = sshll.u32 %s3694_s17, 5 }
 0x170   : > { %s639_s30 = scalar_lea.sflag [#allocation6], %s638_s13  ;;  %s3708_s3 = scalar_lea.vmem [#allocation5], %s2207_s15 }
 0x171   : > { %3177 = dma.done.wait (%p3595_p2), %s639_s30, 512  }
 0x172   : > { %3179 = vsyncadd (%p3595_p2), %s639_s30, 4294966784  ;;  %p3923_p4 = scmp.eq.s32.totalorder %s3353_s0, 0 }
 0x174   : > { %3181 = dma.done.wait (%p3923_p4), [#allocation6], 4096   ;;  %p3924_p3 = pmov %p3923_p4 }
 0x176   : > { %3183 = vsyncadd (%p3924_p3), [#allocation6], 4294963200  ;;  %p3925_p10 = pmov %p3924_p3 }
 0x177   : > { %p3926_p1 = pmov %p3924_p3 }
 0x178   : > { %3185 = dma.done.wait (%p3925_p10), [#allocation9], 2048  }
 0x179   : > { %3187 = vsyncadd (%p3926_p1), [#allocation9], 4294965248  ;;  %p3927_p11 = pmov %p3926_p1 }
 0x17a   : > { %p3928_p12 = pmov %p3926_p1 }
 0x17b   : > { %3189 = dma.done.wait (%p3927_p11), [#allocation12], 1040  }
 0x17c   : > { %3191 = vsyncadd (%p3928_p12), [#allocation12], 4294966256  ;;  %p3929_p2 = pmov %p3926_p1 }
 0x17d   : > { %p3930_p13 = pmov %p3926_p1 }
 0x17e   : > { %3193 = dma.done.wait (%p3929_p2), [#allocation15], 1040  }
 0x17f   : > { %3195 = vsyncadd (%p3930_p13), [#allocation15], 4294966256  ;;  %p3931_p6 = pmov %p3926_p1 }
 0x180   : > { %p3932_p9 = pmov %p3926_p1 }
 0x181   : > { %3197 = dma.done.wait (%p3931_p6), [#allocation18], 3072  }
 0x182   : > { %3199 = vsyncadd (%p3932_p9), [#allocation18], 4294964224  ;;  %v2660_v0 = vld [vmem:[#allocation7 + $0x4] ss:$8 sps:$4 sm:$0xff]   ;;  %v2662_v1 = vld [vmem:[#allocation7] ss:$8 sps:$4 sm:$0xff]   ;;  %v784_v53 = vlaneseq }
 0x183   : > { %954 = vmatprep.subr.bf16.mxu0 %v2660_v0  ;;  %v2663_v2 = vld [vmem:[#allocation7 + $0x14] ss:$8 sps:$4 sm:$0xff]   ;;  %v2665_v3 = vld [vmem:[#allocation7 + $0x10] ss:$8 sps:$4 sm:$0xff]   ;;  %v2666_v4 = vld [vmem:[#allocation7 + $0x24] ss:$8 sps:$4 sm:$0xff]  }
 0x184   : > { %955 = vmatpush1.bf16.msra.mxu0 %v2662_v1  ;;  %v2668_v5 = vld [vmem:[#allocation7 + $0x20] ss:$8 sps:$4 sm:$0xff]   ;;  %v2669_v6 = vld [vmem:[#allocation7 + $0x34] ss:$8 sps:$4 sm:$0xff]   ;;  %v2671_v7 = vld [vmem:[#allocation7 + $0x30] ss:$8 sps:$4 sm:$0xff]  }
 0x185   : > { %956 = vmatprep.subr.bf16.mxu0 %v2663_v2  ;;  %v2672_v8 = vld [vmem:[#allocation7 + $0x44] ss:$8 sps:$4 sm:$0xff]   ;;  %v2674_v9 = vld [vmem:[#allocation7 + $0x40] ss:$8 sps:$4 sm:$0xff]   ;;  %v2675_v10 = vld [vmem:[#allocation7 + $0x54] ss:$8 sps:$4 sm:$0xff]  }
 0x186   : > { %v2677_v11 = vld [vmem:[#allocation7 + $0x50] ss:$8 sps:$4 sm:$0xff]   ;;  %v2678_v12 = vld [vmem:[#allocation7 + $0x64] ss:$8 sps:$4 sm:$0xff]   ;;  %v2680_v16 = vld [vmem:[#allocation7 + $0x60] ss:$8 sps:$4 sm:$0xff]  }
 0x187   : > { %v739_v13 = vld [vmem:[%s3700_s2 + $0x8] sm:$0xff]  ;;  %v741_v14 = vld [vmem:[%s3700_s2 + $0x18] sm:$0xff]  ;;  %v2708_v18 = vld [vmem:[#allocation8] sm:$0xff]   ;;  %v3742_v54 = vshrl.u32 %v784_v53, 7  ;;  %s3933_s4 = sld [smem:[#allocation32_spill]]  ;;  %s3934_s5 = sld [smem:[#allocation34_spill]] }
 0x188   : > { %957 = vmatpush1.bf16.msra.mxu0 %v2665_v3  ;;  %v747_v15 = vpack.c.bf16 %v741_v14, %v739_v13  ;;  %v2681_v17 = vld [vmem:[#allocation7 + $0x74] ss:$8 sps:$4 sm:$0xff]   ;;  %v2709_v19 = vld [vmem:[#allocation8 + $0x8] sm:$0xff]   ;;  %v2683_v20 = vld [vmem:[#allocation7 + $0x70] ss:$8 sps:$4 sm:$0xff]   ;;  %2392 = vmatprep.subr.bf16.mxu1 %v2708_v18  ;;  %s3935_s16 = sld [smem:[#allocation39_spill]] }
 0x189   : > { %958 = vmatprep.subr.bf16.mxu0 %v2666_v4  ;;  %v2684_v21 = vld [vmem:[#allocation7 + $0x84] ss:$8 sps:$4 sm:$0xff]   ;;  %2393 = vmatpush3.bf16.msra.mxu1 %v2708_v18  ;;  %v2710_v22 = vld [vmem:[#allocation8 + $0x10] sm:$0xff]   ;;  %v2686_v23 = vld [vmem:[#allocation7 + $0x80] ss:$8 sps:$4 sm:$0xff]   ;;  %v786_v55 = vsub.s32 0, %v3742_v54 }
 0x18a   : > { %986 = vmatprep.mubr.bf16.mxu0 %v747_v15  ;;  %2394 = vmatprep.subr.bf16.mxu1 %v2709_v19  ;;  %v2687_v24 = vld [vmem:[#allocation7 + $0x94] ss:$8 sps:$4 sm:$0xff]   ;;  %v2689_v26 = vld [vmem:[#allocation7 + $0x90] ss:$8 sps:$4 sm:$0xff]   ;;  %v2690_v27 = vld [vmem:[#allocation7 + $0xa4] ss:$8 sps:$4 sm:$0xff]  }
 0x18b   : > { %v2711_v25 = vld [vmem:[#allocation8 + $0x18] sm:$0xff]   ;;  %v2692_v28 = vld [vmem:[#allocation7 + $0xa0] ss:$8 sps:$4 sm:$0xff]   ;;  %v2696_v31 = vld [vmem:[#allocation7 + $0xc4] ss:$8 sps:$4 sm:$0xff]   ;;  %v790_v57 = vsub.s32 1, %v3742_v54 }
 0x18c   : > { %959 = vmatpush1.bf16.msra.mxu0 %v2668_v5  ;;  %v2693_v29 = vld [vmem:[#allocation7 + $0xb4] ss:$8 sps:$4 sm:$0xff]   ;;  %v2695_v30 = vld [vmem:[#allocation7 + $0xb0] ss:$8 sps:$4 sm:$0xff]   ;;  %v2698_v32 = vld [vmem:[#allocation7 + $0xc0] ss:$8 sps:$4 sm:$0xff]  }
 0x18d   : > { %960 = vmatprep.subr.bf16.mxu0 %v2669_v6  ;;  %2395 = vmatpush3.bf16.msra.mxu1 %v2709_v19  ;;  %v2699_v33 = vld [vmem:[#allocation7 + $0xd4] ss:$8 sps:$4 sm:$0xff]   ;;  %v2701_v34 = vld [vmem:[#allocation7 + $0xd0] ss:$8 sps:$4 sm:$0xff]   ;;  %v2702_v35 = vld [vmem:[#allocation7 + $0xe4] ss:$8 sps:$4 sm:$0xff]  }
 0x18e   : > { %2396 = vmatprep.subr.bf16.mxu1 %v2710_v22  ;;  %v2704_v36 = vld [vmem:[#allocation7 + $0xe0] ss:$8 sps:$4 sm:$0xff]   ;;  %v2705_v37 = vld [vmem:[#allocation7 + $0xf4] ss:$8 sps:$4 sm:$0xff]   ;;  %v2707_v38 = vld [vmem:[#allocation7 + $0xf0] ss:$8 sps:$4 sm:$0xff]  }
 0x18f   : > { %v738_v39 = vld [vmem:[%s3700_s2] sm:$0xff]  ;;  %v740_v40 = vld [vmem:[%s3700_s2 + $0x10] sm:$0xff]  ;;  %v743_v41 = vld [vmem:[%s3700_s2 + $0x28] sm:$0xff]  ;;  %s3237_s13 = smov 64   ;;  %vm1574_vm0 = vcmask 523264   ;;  %s733_s8 = scalar_lea.vmem [#allocation20], %s2206_s21 }
 0x190   : > { %961 = vmatpush1.bf16.msra.mxu0 %v2671_v7  ;;  %v745_v42 = vld [vmem:[%s3700_s2 + $0x38] sm:$0xff]  ;;  %v746_v43 = vpack.c.bf16 %v740_v40, %v738_v39  ;;  %v742_v45 = vld [vmem:[%s3700_s2 + $0x20] sm:$0xff]  ;;  %v744_v46 = vld [vmem:[%s3700_s2 + $0x30] sm:$0xff]  ;;  %s2335_s9 = sshll.u32 %s3353_s0, 10  ;;  %s2005_s20 = sshll.u32 %s733_s8, 4  ;;  %s3805_s20 = int_to_ptr.vmem [resolvable:$true] %s2005_s20 }
 0x191   : > { %962 = vmatprep.subr.bf16.mxu0 %v2672_v8  ;;  %2397 = vmatpush3.bf16.msra.mxu1 %v2710_v22  ;;  %v749_v44 = vpack.c.bf16 %v745_v42, %v743_v41  ;;  %v748_v47 = vpack.c.bf16 %v744_v46, %v742_v45  ;;  %v2712_v48 = vld [vmem:[#allocation8 + $0x20] sm:$0xff]   ;;  %v2713_v49 = vld [vmem:[#allocation8 + $0x28] sm:$0xff]   ;;  %v2714_v50 = vld [vmem:[#allocation8 + $0x30] sm:$0xff]   ;;  %s3939_s1 = sld [smem:[#allocation46_spill]]  ;;  %s1991_s0 = scalar_lea.sflag [#allocation4], %s3694_s17 }
 0x192   : > { %2398 = vmatprep.subr.bf16.mxu1 %v2711_v25  ;;  %v2715_v51 = vld [vmem:[#allocation8 + $0x38] sm:$0xff]   ;;  %v2716_v52 = vld [vmem:[#allocation10] sm:$0xff]   ;;  %v2733_v40 = vld [vmem:[#allocation13 + $0x8] sm:$0xff]   ;;  %s3128_s21 = scalar_lea.vmem %s3805_s20, 1024  ;;  %p3940_p5 = scmp.ne.s32.totalorder %s3916_s10, 0 }
 0x193   : > { %v782_v56 = vld [vmem:[%s3933_s4] sm:$0x3]  ;;  %v2732_v39 = vld [vmem:[#allocation13] sm:$0xff]   ;;  %v2734_v41 = vld [vmem:[#allocation13 + $0x10] sm:$0xff]   ;;  %s3937_s4 = sld [smem:[#allocation43_spill]]  ;;  %p3129_p0 = scmp.ne.s32.totalorder %s3805_s20, %s3128_s21 }
 0x194   : > { %963 = vmatpush1.bf16.msra.mxu0 %v2674_v9  ;;  %v787_v58 = vrot.slane %v782_v56, %v786_v55  ;;  %v791_v59 = vrot.slane %v782_v56, %v790_v57  ;;  %v2735_v42 = vld [vmem:[#allocation13 + $0x18] sm:$0xff]   ;;  %v2738_v45 = vld [vmem:[#allocation13 + $0x30] sm:$0xff]   ;;  %s3239_s2 = smov [#allocation20]  }
 0x195   : > { %964 = vmatprep.subr.bf16.mxu0 %v2675_v10  ;;  %2399 = vmatpush3.bf16.msra.mxu1 %v2711_v25  ;;  %v2718_v25 = vld [vmem:[#allocation10 + $0x10] sm:$0xff]   ;;  %v2739_v46 = vld [vmem:[#allocation13 + $0x38] sm:$0xff]   ;;  %p3130_p7 = pnand %p3129_p0, %p3940_p5 }
 0x196   : > { %2400 = vmatprep.subr.bf16.mxu1 %v2712_v48 }
 0x197   : > { %s3803_s12 = scalar_lea.hbm %s3939_s1, %s2335_s9  ;;  %p3131_p8 = pneg %p3130_p7 }
 0x198   : > { %965 = vmatpush1.bf16.msra.mxu0 %v2677_v11 }
 0x199   : > { %966 = vmatprep.subr.bf16.mxu0 %v2678_v12  ;;  %2401 = vmatpush3.bf16.msra.mxu1 %v2712_v48  ;;  %v2250_v48 = vld [vmem:[%s3934_s5] ss:$0 sm:$0xff]  ;;  %s3938_s5 = sld [smem:[#allocation45_spill]] }
 0x19a   : > { %2402 = vmatprep.subr.bf16.mxu1 %v2713_v49 }
 0x19c   : > { %967 = vmatpush1.bf16.msra.mxu0 %v2680_v16 }
 0x19d   : > { %968 = vmatprep.subr.bf16.mxu0 %v2681_v17  ;;  %2403 = vmatpush3.bf16.msra.mxu1 %v2713_v49 }
 0x19e   : > { %2404 = vmatprep.subr.bf16.mxu1 %v2714_v50 }
 0x1a0   : > { %969 = vmatpush1.bf16.msra.mxu0 %v2683_v20 }
 0x1a1   : > { %970 = vmatprep.subr.bf16.mxu0 %v2684_v21  ;;  %2405 = vmatpush3.bf16.msra.mxu1 %v2714_v50 }
 0x1a2   : > { %2406 = vmatprep.subr.bf16.mxu1 %v2715_v51 }
 0x1a4   : > { %971 = vmatpush1.bf16.msra.mxu0 %v2686_v23  ;;  %v2717_v23 = vld [vmem:[#allocation10 + $0x8] sm:$0xff]  }
 0x1a5   : > { %972 = vmatprep.subr.bf16.mxu0 %v2687_v24  ;;  %2407 = vmatpush3.bf16.msra.mxu1 %v2715_v51 }
 0x1a6   : > { %2412 = vmatprep.subr.bf16.mxu1 %v2716_v52 }
 0x1a8   : > { %973 = vmatpush1.bf16.msra.mxu0 %v2689_v26  ;;  %v2719_v26 = vld [vmem:[#allocation10 + $0x18] sm:$0xff]  }
 0x1a9   : > { %974 = vmatprep.subr.bf16.mxu0 %v2690_v27  ;;  %v2720_v27 = vld [vmem:[#allocation10 + $0x20] sm:$0xff]  }
 0x1ac   : > { %975 = vmatpush1.bf16.msra.mxu0 %v2692_v28  ;;  %v2721_v28 = vld [vmem:[#allocation10 + $0x28] sm:$0xff]  }
 0x1ad   : > { %976 = vmatprep.subr.bf16.mxu0 %v2693_v29  ;;  %v2722_v29 = vld [vmem:[#allocation10 + $0x30] sm:$0xff]  }
 0x1b0   : > { %977 = vmatpush1.bf16.msra.mxu0 %v2695_v30  ;;  %v2723_v30 = vld [vmem:[#allocation10 + $0x38] sm:$0xff]  }
 0x1b1   : > { %978 = vmatprep.subr.bf16.mxu0 %v2696_v31  ;;  %v2724_v31 = vld [vmem:[#allocation16] sm:$0xff]  }
 0x1b4   : > { %979 = vmatpush1.bf16.msra.mxu0 %v2698_v32  ;;  %v2725_v32 = vld [vmem:[#allocation16 + $0x8] sm:$0xff]  }
 0x1b5   : > { %980 = vmatprep.subr.bf16.mxu0 %v2699_v33  ;;  %v2726_v33 = vld [vmem:[#allocation16 + $0x10] sm:$0xff]  }
 0x1b8   : > { %981 = vmatpush1.bf16.msra.mxu0 %v2701_v34  ;;  %v2727_v34 = vld [vmem:[#allocation16 + $0x18] sm:$0xff]  }
 0x1b9   : > { %982 = vmatprep.subr.bf16.mxu0 %v2702_v35  ;;  %v2728_v35 = vld [vmem:[#allocation16 + $0x20] sm:$0xff]  }
 0x1bc   : > { %983 = vmatpush1.bf16.msra.mxu0 %v2704_v36  ;;  %v2729_v36 = vld [vmem:[#allocation16 + $0x28] sm:$0xff]  }
 0x1bd   : > { %984 = vmatprep.subr.bf16.mxu0 %v2705_v37  ;;  %v2730_v37 = vld [vmem:[#allocation16 + $0x30] sm:$0xff]  }
 0x1c0   : > { %985 = vmatpush1.bf16.msra.mxu0 %v2707_v38  ;;  %v2731_v38 = vld [vmem:[#allocation16 + $0x38] sm:$0xff]  }
 0x1c1   : > { %2432 = vmatprep.subr.bf16.mxu0 %v2732_v39 }
 0x1c3   : > { %987 = vmatmul.mubr.bf16.vlgmr.msra.gmra.mrb[0].mxu0 %v746_v43  ;;  %v2736_v43 = vld [vmem:[#allocation13 + $0x20] sm:$0xff]  }
 0x1c4   : > { %996 = vmatprep.mubr.bf16.mxu0 %v749_v44  ;;  %2433 = vmatpush3.bf16.msra.mxu0 %v2732_v39  ;;  %v2737_v44 = vld [vmem:[#allocation13 + $0x28] sm:$0xff]  }
 0x1c5   : > { %2434 = vmatprep.subr.bf16.mxu0 %v2733_v40 }
 0x1c8   : > { %2435 = vmatpush3.bf16.msra.mxu0 %v2733_v40 }
 0x1c9   : > { %2436 = vmatprep.subr.bf16.mxu0 %v2734_v41 }
 0x1cb   : > { %997 = vmatmul.mubr.bf16.gmra.mrb[4].mxu0 %v748_v47 }
 0x1cc   : > { %2437 = vmatpush3.bf16.msra.mxu0 %v2734_v41 }
 0x1cd   : > { %2438 = vmatprep.subr.bf16.mxu0 %v2735_v42 }
 0x1d0   : > { %2439 = vmatpush3.bf16.msra.mxu0 %v2735_v42 }
 0x1d1   : > { %2440 = vmatprep.subr.bf16.mxu0 %v2736_v43 }
 0x1d4   : > { %2441 = vmatpush3.bf16.msra.mxu0 %v2736_v43  ;;  %v1385_v43 = vld [vmem:[%s3708_s3] sm:$0xff] }
 0x1d5   : > { %2442 = vmatprep.subr.bf16.mxu0 %v2737_v44 }
 0x1d8   : > { %2443 = vmatpush3.bf16.msra.mxu0 %v2737_v44 }
 0x1d9   : > { %2444 = vmatprep.subr.bf16.mxu0 %v2738_v45 }
 0x1dc   : > { %2445 = vmatpush3.bf16.msra.mxu0 %v2738_v45  ;;  %v1387_v45 = vld [vmem:[%s3708_s3 + $0x10] sm:$0xff] }
 0x1dd   : > { %2446 = vmatprep.subr.bf16.mxu0 %v2739_v46 }
 0x1e0   : > { %2447 = vmatpush3.bf16.msra.mxu0 %v2739_v46  ;;  %v1388_v46 = vld [vmem:[%s3708_s3 + $0x18] sm:$0xff] }
 0x296   : > { %v988_v60 = vpop.f32.mrb[0].mxu0 }
 0x297   : > { %v989_v61 = vadd.f32 %v988_v60, %v787_v58  ;;  %v990_v62 = vpop.f32.mrb[1].mxu0 }
 0x298   : > { %v991_v63 = vadd.f32 %v990_v62, %v791_v59  ;;  %v992_v0 = vpop.f32.mrb[2].mxu0 }
 0x299   : > { %v993_v1 = vadd.f32 %v992_v0, %v787_v58  ;;  %v994_v2 = vpop.f32.mrb[3].mxu0  ;;  %v1007_v4 = vmax.f32 %v989_v61, 0.0  ;;  %v2259_v61 = vld [vmem:[#allocation11] ss:$0 sm:$0xff] }
 0x29a   : > { %v995_v3 = vadd.f32 %v994_v2, %v791_v59  ;;  %v1008_v6 = vmax.f32 %v991_v63, 0.0 }
 0x29b   : > { %v1009_v5 = vmax.f32 %v993_v1, 0.0 }
 0x29c   : > { %v1010_v7 = vmax.f32 %v995_v3, 0.0 }
 0x29d   : > { %v1015_v8 = vpack.c.bf16 %v1009_v5, %v1007_v4 }
 0x29e   : > { %v1017_v9 = vpack.c.bf16 %v1010_v7, %v1008_v6  ;;  %v998_v10 = vpop.f32.mrb[4].mxu0 }
 0x29f   : > { %v999_v11 = vadd.f32 %v998_v10, %v787_v58  ;;  %v1000_v12 = vpop.f32.mrb[5].mxu0  ;;  %2408 = vmatprep.mubr.bf16.mxu1 %v1015_v8 }
 0x2a0   : > { %v1001_v13 = vadd.f32 %v1000_v12, %v791_v59  ;;  %v1002_v14 = vpop.f32.mrb[6].mxu0  ;;  %v2740_v12 = vld [vmem:[%s3935_s16] sm:$0xff]  }
 0x2a1   : > { %v1003_v15 = vadd.f32 %v1002_v14, %v787_v58  ;;  %v1004_v16 = vpop.f32.mrb[7].mxu0  ;;  %v1011_v18 = vmax.f32 %v999_v11, 0.0  ;;  %2472 = vmatprep.subr.bf16.mxu0 %v2740_v12 }
 0x2a2   : > { %v1005_v17 = vadd.f32 %v1004_v16, %v791_v59  ;;  %v1012_v20 = vmax.f32 %v1001_v13, 0.0 }
 0x2a3   : > { %v1013_v19 = vmax.f32 %v1003_v15, 0.0 }
 0x2a4   : > { %v1014_v21 = vmax.f32 %v1005_v17, 0.0  ;;  %v2268_v17 = vld [vmem:[#allocation14] ss:$0 sm:$0xff] }
 0x2a5   : > { %v1016_v22 = vpack.c.bf16 %v1013_v19, %v1011_v18 }
 0x2a6   : > { %v1018_v24 = vpack.c.bf16 %v1014_v21, %v1012_v20 }
 0x2a7   : > { %2409 = vmatmul.mubr.bf16.vlgmr.msra.gmra.mrb[0].mxu1 %v1016_v22 }
 0x2a8   : > { %2413 = vmatpush3.bf16.msra.mxu1 %v2716_v52  ;;  %2428 = vmatprep.mubr.bf16.mxu1 %v1017_v9 }
 0x2a9   : > { %2414 = vmatprep.subr.bf16.mxu1 %v2717_v23 }
 0x2ac   : > { %2415 = vmatpush3.bf16.msra.mxu1 %v2717_v23 }
 0x2ad   : > { %2416 = vmatprep.subr.bf16.mxu1 %v2718_v25 }
 0x2b0   : > { %2417 = vmatpush3.bf16.msra.mxu1 %v2718_v25 }
 0x2b1   : > { %2418 = vmatprep.subr.bf16.mxu1 %v2719_v26 }
 0x2b4   : > { %2419 = vmatpush3.bf16.msra.mxu1 %v2719_v26  ;;  %v2741_v26 = vld [vmem:[%s3935_s16 + $0x8] sm:$0xff]  }
 0x2b5   : > { %2420 = vmatprep.subr.bf16.mxu1 %v2720_v27 }
 0x2b8   : > { %2421 = vmatpush3.bf16.msra.mxu1 %v2720_v27 }
 0x2b9   : > { %2422 = vmatprep.subr.bf16.mxu1 %v2721_v28 }
 0x2bc   : > { %2423 = vmatpush3.bf16.msra.mxu1 %v2721_v28 }
 0x2bd   : > { %2424 = vmatprep.subr.bf16.mxu1 %v2722_v29 }
 0x2c0   : > { %2425 = vmatpush3.bf16.msra.mxu1 %v2722_v29 }
 0x2c1   : > { %2426 = vmatprep.subr.bf16.mxu1 %v2723_v30 }
 0x2c4   : > { %2427 = vmatpush3.bf16.msra.mxu1 %v2723_v30 }
 0x2c5   : > { %2452 = vmatprep.subr.bf16.mxu1 %v2724_v31 }
 0x2c7   : > { %2429 = vmatmul.mubr.bf16.vlgmr.msra.gmra.mrb[4].mxu1 %v1018_v24 }
 0x2c8   : > { %2453 = vmatpush3.bf16.msra.mxu1 %v2724_v31 }
 0x2c9   : > { %2454 = vmatprep.subr.bf16.mxu1 %v2725_v32 }
 0x2cc   : > { %2455 = vmatpush3.bf16.msra.mxu1 %v2725_v32 }
 0x2cd   : > { %2456 = vmatprep.subr.bf16.mxu1 %v2726_v33 }
 0x2d0   : > { %2457 = vmatpush3.bf16.msra.mxu1 %v2726_v33 }
 0x2d1   : > { %2458 = vmatprep.subr.bf16.mxu1 %v2727_v34 }
 0x2d4   : > { %2459 = vmatpush3.bf16.msra.mxu1 %v2727_v34  ;;  %v2742_v34 = vld [vmem:[%s3935_s16 + $0x10] sm:$0xff]  }
 0x2d5   : > { %2460 = vmatprep.subr.bf16.mxu1 %v2728_v35 }
 0x2d8   : > { %2461 = vmatpush3.bf16.msra.mxu1 %v2728_v35 }
 0x2d9   : > { %2462 = vmatprep.subr.bf16.mxu1 %v2729_v36 }
 0x2dc   : > { %2463 = vmatpush3.bf16.msra.mxu1 %v2729_v36  ;;  %v2743_v36 = vld [vmem:[%s3935_s16 + $0x18] sm:$0xff]  }
 0x2dd   : > { %2464 = vmatprep.subr.bf16.mxu1 %v2730_v37 }
 0x2e0   : > { %2465 = vmatpush3.bf16.msra.mxu1 %v2730_v37 }
 0x2e1   : > { %2466 = vmatprep.subr.bf16.mxu1 %v2731_v38 }
 0x2e4   : > { %2467 = vmatpush3.bf16.msra.mxu1 %v2731_v38  ;;  %v2744_v38 = vld [vmem:[#allocation17] sm:$0xff]  }
 0x37a   : > { %v2410_v47 = vpop.f32.mrb[0].mxu1 }
 0x37b   : > { %v1124_v49 = vpop.f32.mrb[1].mxu1  ;;  %v1133_v51 = vadd.f32 %v2410_v47, %v2250_v48  ;;  %v1386_v47 = vld [vmem:[%s3708_s3 + $0x8] sm:$0xff]  ;;  %s3936_s3 = sld [smem:[#allocation41_spill]] }
 0x37c   : > { %v2411_v50 = vpop.f32.mrb[2].mxu1  ;;  %v1125_v56 = vadd.f32 %v2250_v48, %v1124_v49 }
 0x37d   : > { %v1136_v52 = vadd.f32 %v2411_v50, %v2250_v48  ;;  %v1127_v53 = vpop.f32.mrb[3].mxu1 }
 0x37e   : > { %v1128_v58 = vadd.f32 %v2250_v48, %v1127_v53 }
 0x37f   : > { %v1436_v59 = vpack.c.bf16 %v1136_v52, %v1133_v51 }
 0x380   : > { %v1435_v60 = vpack.c.bf16 %v1128_v58, %v1125_v56 }
 0x382   : > { %2468 = vmatprep.mubr.bf16.mxu1 %v1435_v60 }
 0x383   : > { %2469 = vmatmul.mubr.bf16.vlgmr.msra.gmra.mrb[8].mxu1 %v1436_v59 }
 0x39a   : > { %v2430_v62 = vpop.f32.mrb[4].mxu1 }
 0x39b   : > { %v1253_v63 = vadd.f32 %v2430_v62, %v2259_v61  ;;  %v1244_v0 = vpop.f32.mrb[5].mxu1 }
 0x39c   : > { %v1245_v1 = vadd.f32 %v2259_v61, %v1244_v0  ;;  %v2431_v2 = vpop.f32.mrb[6].mxu1  ;;  %v2746_v0 = vld [vmem:[#allocation17 + $0x10] sm:$0xff]  }
 0x39d   : > { %v1256_v3 = vadd.f32 %v2431_v2, %v2259_v61  ;;  %v1247_v4 = vpop.f32.mrb[7].mxu1  ;;  %v1261_v6 = vmax.f32 %v1253_v63, 0.0  ;;  %v2745_v63 = vld [vmem:[#allocation17 + $0x8] sm:$0xff]   ;;  %v2748_v2 = vld [vmem:[#allocation17 + $0x20] sm:$0xff]  }
 0x39e   : > { %v1248_v5 = vadd.f32 %v2259_v61, %v1247_v4  ;;  %v1259_v8 = vmax.f32 %v1245_v1, 0.0  ;;  %v2747_v1 = vld [vmem:[#allocation17 + $0x18] sm:$0xff]   ;;  %v2750_v4 = vld [vmem:[#allocation17 + $0x30] sm:$0xff]  }
 0x39f   : > { %v1262_v7 = vmax.f32 %v1256_v3, 0.0  ;;  %v2749_v3 = vld [vmem:[#allocation17 + $0x28] sm:$0xff]  }
 0x3a0   : > { %v1260_v9 = vmax.f32 %v1248_v5, 0.0  ;;  %v2751_v5 = vld [vmem:[#allocation17 + $0x38] sm:$0xff]  }
 0x3a1   : > { %v1264_v10 = vpack.c.bf16 %v1262_v7, %v1261_v6  ;;  %v2752_v6 = vld [vmem:[#allocation19] ss:$8 sps:$4 sm:$0xff]   ;;  %v2754_v7 = vld [vmem:[#allocation19 + $0x4] ss:$8 sps:$4 sm:$0xff]  }
 0x3a2   : > { %v1263_v11 = vpack.c.bf16 %v1260_v9, %v1259_v8  ;;  %v2757_v8 = vld [vmem:[#allocation19 + $0x14] ss:$8 sps:$4 sm:$0xff]   ;;  %1881 = vmatprep.subr.bf16.mxu1 %v2754_v7  ;;  %v2755_v9 = vld [vmem:[#allocation19 + $0x10] ss:$8 sps:$4 sm:$0xff]  }
 0x3a3   : > { %1882 = vmatpush1.bf16.msra.mxu1 %v2752_v6 }
 0x3a4   : > { %2448 = vmatprep.mubr.bf16.mxu0 %v1263_v11  ;;  %1883 = vmatprep.subr.bf16.mxu1 %v2757_v8  ;;  %v2758_v11 = vld [vmem:[#allocation19 + $0x20] ss:$8 sps:$4 sm:$0xff]  }
 0x3a5   : > { %2449 = vmatmul.mubr.bf16.vlgmr.msra.gmra.mrb[8].mxu0 %v1264_v10  ;;  %v2760_v10 = vld [vmem:[#allocation19 + $0x24] ss:$8 sps:$4 sm:$0xff]  }
 0x3a6   : > { %2473 = vmatpush3.bf16.msra.mxu0 %v2740_v12  ;;  %v2763_v12 = vld [vmem:[#allocation19 + $0x34] ss:$8 sps:$4 sm:$0xff]  }
 0x3a7   : > { %2474 = vmatprep.subr.bf16.mxu0 %v2741_v26  ;;  %1884 = vmatpush1.bf16.msra.mxu1 %v2755_v9 }
 0x3a8   : > { %1885 = vmatprep.subr.bf16.mxu1 %v2760_v10 }
 0x3aa   : > { %2475 = vmatpush3.bf16.msra.mxu0 %v2741_v26 }
 0x3ab   : > { %2476 = vmatprep.subr.bf16.mxu0 %v2742_v34  ;;  %1886 = vmatpush1.bf16.msra.mxu1 %v2758_v11 }
 0x3ac   : > { %1887 = vmatprep.subr.bf16.mxu1 %v2763_v12 }
 0x3ae   : > { %2477 = vmatpush3.bf16.msra.mxu0 %v2742_v34 }
 0x3af   : > { %2478 = vmatprep.subr.bf16.mxu0 %v2743_v36 }
 0x3b2   : > { %2479 = vmatpush3.bf16.msra.mxu0 %v2743_v36 }
 0x3b3   : > { %2484 = vmatprep.subr.bf16.mxu0 %v2744_v38 }
 0x456   : > { %v3759_v13 = vpop.f32.mrb[8].mxu1 }
 0x457   : > { %v3761_v14 = vpop.f32.mrb[9].mxu1 }
 0x458   : > { %v3763_v15 = vpop.f32.mrb[10].mxu1 }
 0x459   : > { %v3765_v16 = vpop.f32.mrb[11].mxu1 }
 0x478   : > { %v2450_v18 = vpop.f32.mrb[8].mxu0 }
 0x479   : > { %v1379_v19 = vadd.f32 %v2450_v18, %v2268_v17  ;;  %v1370_v20 = vpop.f32.mrb[9].mxu0  ;;  %v2766_v18 = vld [vmem:[#allocation19 + $0x44] ss:$8 sps:$4 sm:$0xff]  }
 0x47a   : > { %v1371_v21 = vadd.f32 %v2268_v17, %v1370_v20  ;;  %v2451_v22 = vpop.f32.mrb[10].mxu0  ;;  %v2769_v20 = vld [vmem:[#allocation19 + $0x54] ss:$8 sps:$4 sm:$0xff]  }
 0x47b   : > { %v1391_v23 = vmul.f32 0.5, %v1379_v19  ;;  %v1382_v24 = vadd.f32 %v2451_v22, %v2268_v17  ;;  %v1373_v25 = vpop.f32.mrb[11].mxu0 }
 0x47c   : > { %v1389_v27 = vmul.f32 0.5, %v1371_v21  ;;  %v1374_v28 = vadd.f32 %v2268_v17, %v1373_v25  ;;  %v2761_v17 = vld [vmem:[#allocation19 + $0x30] ss:$8 sps:$4 sm:$0xff]  }
 0x47d   : > { %v1397_v29 = vmul.f32 1.442695, %v1391_v23  ;;  %v1392_v30 = vmul.f32 0.5, %v1382_v24  ;;  %1888 = vmatpush1.bf16.msra.mxu1 %v2761_v17  ;;  %v2291_v23 = vld [vmem:[%s3936_s3] ss:$0 sm:$0xff] }
 0x47e   : > { %v1393_v31 = vmul.f32 1.442695, %v1389_v27  ;;  %v1390_v32 = vmul.f32 0.5, %v1374_v28  ;;  %1889 = vmatprep.subr.bf16.mxu1 %v2766_v18 }
 0x47f   : > { %2776 = vpow2.f32 %v1397_v29  ;;  %v1399_v33 = vmul.f32 1.442695, %v1392_v30 }
 0x480   : > { %2778 = vpow2.f32 %v1393_v31  ;;  %v1395_v35 = vmul.f32 1.442695, %v1390_v32 }
 0x481   : > { %2780 = vpow2.f32 %v1399_v33 }
 0x482   : > { %2782 = vpow2.f32 %v1395_v35 }
 0x489   : > { %v2777_v37 = vpop.eup %2776 }
 0x48a   : > { %v2779_v39 = vpop.eup %2778  ;;  %1409 = vrot.lane.b32.xlu1 %v2777_v37, %s3237_s13 }
 0x48b   : > { %1405 = vrot.lane.b32.xlu0 %v2779_v39, %s3237_s13  ;;  %v2781_v40 = vpop.eup %2780 }
 0x48c   : > { %v2783_v41 = vpop.eup %2782 }
 0x48e   : > { %1411 = vrot.lane.b32.xlu1 %v2781_v40, %s3237_s13 }
 0x48f   : > { %1407 = vrot.lane.b32.xlu0 %v2783_v41, %s3237_s13  ;;  %v2775_v41 = vld [vmem:[#allocation19 + $0x74] ss:$8 sps:$4 sm:$0xff]   ;;  %s3132_s13 = sshll.u32 %s3239_s2, 4  ;;  %s3133_s13 = int_to_ptr.vmem [resolvable:$false] %s3132_s13 }
 0x490   : > { %s3134_s15 = scalar_lea.vmem %s3133_s13, 2048  ;;  %p3135_p4 = scmp.lt.s32.totalorder %s3805_s20, %s3133_s13 }
 0x491   : > { %p3136_p3 = scmp.lt.s32.totalorder %s3134_s15, %s3128_s21 }
 0x493   : > { %p3137_p10 = por %p3136_p3, %p3135_p4 }
 0x495   : > { %p3138_p1 = pnand %p3137_p10, %p3131_p8 }
 0x4fc   : > { %v1410_v42 = vpop.permute.xlu1 %1409 }
 0x4fd   : > { %v1406_v44 = vpop.permute.xlu0 %1405  ;;  %v1419_v50 = vmul.f32 %v1410_v42, %v1387_v45  ;;  %v3238_v42 = vmov 0  }
 0x4fe   : > { %v1417_v48 = vmul.f32 %v1406_v44, %v1385_v43  ;;  %1913 = vmatprep.mubr.bf16.mxu1 %v3238_v42 }
 0x4ff   : > { %v1423_v60 = vadd.f32 %v1419_v50, %v1379_v19  ;;  %v2764_v19 = vld [vmem:[#allocation19 + $0x40] ss:$8 sps:$4 sm:$0xff]  }
 0x500   : > { %v1412_v49 = vpop.permute.xlu1 %1411  ;;  %v1421_v58 = vadd.f32 %v1417_v48, %v1371_v21  ;;  %1890 = vmatpush1.bf16.msra.mxu1 %v2764_v19  ;;  %v2767_v21 = vld [vmem:[#allocation19 + $0x50] ss:$8 sps:$4 sm:$0xff]  }
 0x501   : > { %v1420_v51 = vmul.f32 %v1412_v49, %v1388_v46  ;;  %v1408_v52 = vpop.permute.xlu0 %1407  ;;  %1891 = vmatprep.subr.bf16.mxu1 %v2769_v20 }
 0x502   : > { %v1418_v53 = vmul.f32 %v1408_v52, %v1386_v47 }
 0x503   : > { %v1424_v56 = vadd.f32 %v1420_v51, %v1382_v24 }
 0x504   : > { %v1422_v59 = vadd.f32 %v1418_v53, %v1374_v28  ;;  %1892 = vmatpush1.bf16.msra.mxu1 %v2767_v21 }
 0x505   : > { %v1426_v62 = vpack.c.bf16 %v1424_v56, %v1423_v60  ;;  %v1789_v60 = vld [vmem:[%s3938_s5] sm:$0x3] }
 0x506   : > { %v1425_v61 = vpack.c.bf16 %v1422_v59, %v1421_v58 }
 0x508   : > { %2480 = vmatprep.mubr.msk.bf16.mxu0 %vm1574_vm0, %v1425_v61  ;;  %v1794_v61 = vrot.slane %v1789_v60, %v786_v55 }
 0x509   : > { %2481 = vmatmul.mubr.msk.bf16.vlgmr.msra.gmra.mrb[12].mxu0 %vm1574_vm0, %v1426_v62  ;;  %v1798_v62 = vrot.slane %v1789_v60, %v790_v57 }
 0x50a   : > { %2485 = vmatpush3.bf16.msra.mxu0 %v2744_v38 }
 0x50b   : > { %2486 = vmatprep.subr.bf16.mxu0 %v2745_v63 }
 0x50e   : > { %2487 = vmatpush3.bf16.msra.mxu0 %v2745_v63 }
 0x50f   : > { %2488 = vmatprep.subr.bf16.mxu0 %v2746_v0 }
 0x512   : > { %2489 = vmatpush3.bf16.msra.mxu0 %v2746_v0 }
 0x513   : > { %2490 = vmatprep.subr.bf16.mxu0 %v2747_v1 }
 0x516   : > { %2491 = vmatpush3.bf16.msra.mxu0 %v2747_v1 }
 0x517   : > { %2492 = vmatprep.subr.bf16.mxu0 %v2748_v2 }
 0x51a   : > { %2493 = vmatpush3.bf16.msra.mxu0 %v2748_v2 }
 0x51b   : > { %2494 = vmatprep.subr.bf16.mxu0 %v2749_v3 }
 0x51e   : > { %2495 = vmatpush3.bf16.msra.mxu0 %v2749_v3 }
 0x51f   : > { %2496 = vmatprep.subr.bf16.mxu0 %v2750_v4 }
 0x522   : > { %2497 = vmatpush3.bf16.msra.mxu0 %v2750_v4 }
 0x523   : > { %2498 = vmatprep.subr.bf16.mxu0 %v2751_v5 }
 0x526   : > { %2499 = vmatpush3.bf16.msra.mxu0 %v2751_v5 }
 0x5dc   : > { %v2482_v22 = vpop.f32.mrb[12].mxu0 }
 0x5dd   : > { %v1624_v24 = vadd.f32 %v2482_v22, %v3759_v13  ;;  %v1615_v25 = vpop.f32.mrb[13].mxu0  ;;  %v2772_v13 = vld [vmem:[#allocation19 + $0x64] ss:$8 sps:$4 sm:$0xff]  }
 0x5de   : > { %v1616_v26 = vadd.f32 %v1615_v25, %v3761_v14  ;;  %v2483_v27 = vpop.f32.mrb[14].mxu0  ;;  %v2770_v14 = vld [vmem:[#allocation19 + $0x60] ss:$8 sps:$4 sm:$0xff]   ;;  %1893 = vmatprep.subr.bf16.mxu1 %v2772_v13 }
 0x5df   : > { %v1639_v28 = vadd.f32 %v2291_v23, %v1624_v24  ;;  %v1627_v29 = vadd.f32 %v2483_v27, %v3763_v15  ;;  %v1618_v30 = vpop.f32.mrb[15].mxu0  ;;  %1894 = vmatpush1.bf16.msra.mxu1 %v2770_v14  ;;  %v2773_v15 = vld [vmem:[#allocation19 + $0x70] ss:$8 sps:$4 sm:$0xff]  }
 0x5e0   : > { %v1637_v31 = vadd.f32 %v2291_v23, %v1616_v26  ;;  %v1619_v32 = vadd.f32 %v1618_v30, %v3765_v16  ;;  %1895 = vmatprep.subr.bf16.mxu1 %v2775_v41  ;;  %v2292_v16 = vld [vmem:[%s3937_s4] ss:$0 sm:$0xff] }
 0x5e1   : > { %v1640_v33 = vadd.f32 %v2291_v23, %v1627_v29  ;;  %v1643_v35 = vmax.f32 %v1639_v28, 0.0 }
 0x5e2   : > { %v1638_v34 = vadd.f32 %v2291_v23, %v1619_v32  ;;  %v1641_v37 = vmax.f32 %v1637_v31, 0.0 }
 0x5e3   : > { %v1644_v36 = vmax.f32 %v1640_v33, 0.0  ;;  %1896 = vmatpush1.bf16.msra.mxu1 %v2773_v15 }
 0x5e4   : > { %v1642_v38 = vmax.f32 %v1638_v34, 0.0 }
 0x5e5   : > { %v1646_v39 = vpack.c.bf16 %v1644_v36, %v1643_v35 }
 0x5e6   : > { %v1645_v40 = vpack.c.bf16 %v1642_v38, %v1641_v37 }
 0x5e8   : > { %2500 = vmatprep.mubr.bf16.mxu0 %v1645_v40 }
 0x5e9   : > { %2501 = vmatmul.mubr.bf16.vlgmr.msra.gmra.mrb[16].mxu0 %v1646_v39 }
 0x6bc   : > { %v2502_v43 = vpop.f32.mrb[16].mxu0 }
 0x6bd   : > { %v1761_v44 = vadd.f32 %v2502_v43, %v2292_v16  ;;  %v1752_v45 = vpop.f32.mrb[17].mxu0 }
 0x6be   : > { %v1753_v46 = vadd.f32 %v2292_v16, %v1752_v45  ;;  %v2503_v47 = vpop.f32.mrb[18].mxu0 }
 0x6bf   : > { %v1764_v48 = vadd.f32 %v2503_v47, %v2292_v16  ;;  %v1755_v49 = vpop.f32.mrb[19].mxu0  ;;  %v1769_v51 = vmax.f32 %v1761_v44, 0.0 }
 0x6c0   : > { %v1756_v50 = vadd.f32 %v2292_v16, %v1755_v49  ;;  %v1767_v53 = vmax.f32 %v1753_v46, 0.0 }
 0x6c1   : > { %v1770_v52 = vmax.f32 %v1764_v48, 0.0 }
 0x6c2   : > { %v1768_v56 = vmax.f32 %v1756_v50, 0.0 }
 0x6c3   : > { %v1772_v58 = vpack.c.bf16 %v1770_v52, %v1769_v51 }
 0x6c4   : > { %v1771_v59 = vpack.c.bf16 %v1768_v56, %v1767_v53 }
 0x6c6   : > { %1914 = vmatmul.mubr.bf16.vlgmr.msra.gmra.mrb[12].mxu1 %v1771_v59 }
 0x6c7   : > { %1923 = vmatprep.mubr.bf16.mxu1 %v3238_v42 }
 0x6ce   : > { %1924 = vmatmul.mubr.bf16.gmra.mrb[16].mxu1 %v1772_v58 }
 0x799   : > { %v1915_v63 = vpop.f32.mrb[12].mxu1 }
 0x79a   : > { %v1916_v0 = vadd.f32 %v1915_v63, %v1794_v61  ;;  %v1917_v1 = vpop.f32.mrb[13].mxu1 }
 0x79b   : > { %v1918_v2 = vadd.f32 %v1917_v1, %v1798_v62  ;;  %v1919_v3 = vpop.f32.mrb[14].mxu1 }
 0x79c   : > { %v2317_v4 = vmul.f32 -1.442695, %v1916_v0  ;;  %v1920_v5 = vadd.f32 %v1919_v3, %v1794_v61  ;;  %v1921_v6 = vpop.f32.mrb[15].mxu1 }
 0x79d   : > { %v2318_v7 = vmul.f32 -1.442695, %v1918_v2  ;;  %v1922_v8 = vadd.f32 %v1921_v6, %v1798_v62 }
 0x79e   : > { %2784 = vpow2.f32 %v2317_v4  ;;  %v2319_v9 = vmul.f32 -1.442695, %v1920_v5 }
 0x79f   : > { %2786 = vpow2.f32 %v2318_v7  ;;  %v2320_v10 = vmul.f32 -1.442695, %v1922_v8 }
 0x7a0   : > { %2788 = vpow2.f32 %v2319_v9 }
 0x7a1   : > { %2790 = vpow2.f32 %v2320_v10  ;;  %v1925_v55 = vpop.f32.mrb[16].mxu1 }
 0x7a2   : > { %v1926_v11 = vadd.f32 %v1925_v55, %v1794_v61  ;;  %v1927_v54 = vpop.f32.mrb[17].mxu1 }
 0x7a3   : > { %v1928_v57 = vadd.f32 %v1927_v54, %v1798_v62  ;;  %v1929_v12 = vpop.f32.mrb[18].mxu1 }
 0x7a4   : > { %v2321_v17 = vmul.f32 -1.442695, %v1926_v11  ;;  %v1930_v18 = vadd.f32 %v1929_v12, %v1794_v61  ;;  %v1931_v19 = vpop.f32.mrb[19].mxu1 }
 0x7a5   : > { %v2322_v20 = vmul.f32 -1.442695, %v1928_v57  ;;  %v1932_v21 = vadd.f32 %v1931_v19, %v1798_v62 }
 0x7a6   : > { %2792 = vpow2.f32 %v2321_v17  ;;  %v2323_v22 = vmul.f32 -1.442695, %v1930_v18 }
 0x7a7   : > { %2794 = vpow2.f32 %v2322_v20  ;;  %v2324_v23 = vmul.f32 -1.442695, %v1932_v21 }
 0x7a8   : > { %v2785_v24 = vpop.eup %2784  ;;  %2796 = vpow2.f32 %v2323_v22 }
 0x7a9   : > { %v2787_v25 = vpop.eup %2786  ;;  %v1958_v26 = vadd.f32 1.0, %v2785_v24  ;;  %2798 = vpow2.f32 %v2324_v23 }
 0x7aa   : > { %v2789_v27 = vpop.eup %2788  ;;  %v1959_v28 = vadd.f32 1.0, %v2787_v25 }
 0x7ab   : > { %v2791_v29 = vpop.eup %2790  ;;  %2800 = vrcp.f32 %v1958_v26  ;;  %v1960_v30 = vadd.f32 1.0, %v2789_v27 }
 0x7ac   : > { %2802 = vrcp.f32 %v1959_v28  ;;  %v1961_v31 = vadd.f32 1.0, %v2791_v29 }
 0x7ad   : > { %2804 = vrcp.f32 %v1960_v30 }
 0x7ae   : > { %2806 = vrcp.f32 %v1961_v31 }
 0x7b0   : > { %v2793_v32 = vpop.eup %2792 }
 0x7b1   : > { %v2795_v33 = vpop.eup %2794  ;;  %v1962_v34 = vadd.f32 1.0, %v2793_v32 }
 0x7b2   : > { %v2797_v35 = vpop.eup %2796  ;;  %v1963_v36 = vadd.f32 1.0, %v2795_v33 }
 0x7b3   : > { %v2799_v37 = vpop.eup %2798  ;;  %2808 = vrcp.f32 %v1962_v34  ;;  %v1964_v38 = vadd.f32 1.0, %v2797_v35 }
 0x7b4   : > { %2810 = vrcp.f32 %v1963_v36  ;;  %v1965_v39 = vadd.f32 1.0, %v2799_v37 }
 0x7b5   : > { %v2801_v40 = vpop.eup %2800  ;;  %2812 = vrcp.f32 %v1964_v38 }
 0x7b6   : > { %v2803_v13 = vpop.eup %2802  ;;  %1982 = vst [vmem:[%s733_s8] sm:$0xff] %v2801_v40  ;;  %2814 = vrcp.f32 %v1965_v39 }
 0x7b7   : > { %v2805_v14 = vpop.eup %2804  ;;  %1983 = vst [vmem:[%s733_s8 + $0x8] sm:$0xff] %v2803_v13 }
 0x7b8   : > { %v2807_v41 = vpop.eup %2806  ;;  %1984 = vst [vmem:[%s733_s8 + $0x10] sm:$0xff] %v2805_v14 }
 0x7b9   : > { %1985 = vst [vmem:[%s733_s8 + $0x18] sm:$0xff] %v2807_v41 }
 0x7bd   : > { %v2809_v15 = vpop.eup %2808 }
 0x7be   : > { %v2811_v42 = vpop.eup %2810  ;;  %1986 = vst [vmem:[%s733_s8 + $0x20] sm:$0xff] %v2809_v15 }
 0x7bf   : > { %v2813_v16 = vpop.eup %2812  ;;  %1987 = vst [vmem:[%s733_s8 + $0x28] sm:$0xff] %v2811_v42 }
 0x7c0   : > { %v2815_v43 = vpop.eup %2814  ;;  %1988 = vst [vmem:[%s733_s8 + $0x30] sm:$0xff] %v2813_v16 }
 0x7c1   : > { %1989 = vst [vmem:[%s733_s8 + $0x38] sm:$0xff] %v2815_v43 }
 0x7c2   : > { %3141 = shalt.err (!%p3138_p1)
}
 0x7c3   : > { %s3142_s30 = scalar_lea.hbm %s3803_s12, 1024  ;;  %s3146_s29 = scalar_lea.hbm %s3939_s1, 2048 }
 0x7c4   : > { %p3143_p11 = scmp.ne.s32.totalorder %s3803_s12, %s3142_s30  ;;  %p3147_p13 = scmp.lt.u32.totalorder %s3803_s12, %s3939_s1 }
 0x7c5   : > { %p3148_p6 = scmp.lt.u32.totalorder %s3146_s29, %s3142_s30  ;;  %p3150_p0 = scmp.lt.u32.totalorder %s3142_s30, %s3803_s12 }
 0x7c6   : > { %p3144_p12 = pnand %p3143_p11, %p3940_p5 }
 0x7c7   : > { %p3149_p9 = por %p3148_p6, %p3147_p13 }
 0x7c8   : > { %p3145_p2 = pneg %p3144_p12 }
 0x7c9   : > { %p3151_p7 = por %p3150_p0, %p3149_p9 }
 0x7cb   : > { %p3152_p8 = pnand %p3151_p7, %p3145_p2 }
 0x7cd   : > { %3155 = shalt.err (!%p3152_p8)
}
 0x7ce   : > { %s3240_s7 = smov 256   ;;  %s3241_s5 = smov 16  }
 0x7cf   : > { %2548 = dma.vmem_to_hbm [thread:$0]  (%p3940_p5), %s3805_s20, 1024, %s3803_s12, %s1991_s0, %s3240_s7, %s3240_s7, %s3241_s5  }
 0x7d0 PF: > { %s2020_s8 = sand.u32 1, %s3206_s24   ;;  %p3941_p4 = scmp.ne.s32.totalorder %s3917_s19, 0 }
 0x7d1   : > { %p3942_p3 = scmp.ge.s32.totalorder %s3218_s27, 2  ;;  %s2021_s9 = scalar_lea.sflag [#allocation4], %s2020_s8 }
 0x7d3   : > { %p2586_p10 = pnand %p3942_p3, %p3941_p4 }
 0x7d5   : > { %3201 = dma.done.wait (!%p2586_p10), %s2021_s9, 1024  }
 0x7d6   : > { %3203 = vsyncadd (!%p2586_p10), %s2021_s9, 4294966272  ;;  %p37_p1 = scmp.ge.s32.totalorder %s3579_s18, 4   ;;  %s3943_s24 = smov %s3210_s25 }
 0x7d7   : > { %s3944_s25 = smov %s3214_s26  ;;  %s3945_s26 = smov %s3591_s28 }
 0x7d8   : > { %s3946_s27 = smov %s3579_s18  ;;  %39 = sbr.rel (!%p37_p1) target bundleno = 30 (0x1e), region = 182 }
 0x7df   :  { %2026 = vsyncpa [#allocation3], 1 }
 0x7e0   :  { %2028 = vsyncpa [#allocation3 + $0x1], 1 }
 0x7e1   :  { %2029 = vsyncpa [#allocation6], 1 }
 0x7e2   :  { %2031 = vsyncpa [#allocation6 + $0x1], 1 }
 0x7e3   :  { %2032 = vsyncpa [#allocation9], 1 }
 0x7e4   :  { %2033 = vsyncpa [#allocation12], 1 }
 0x7e5   :  { %2034 = vsyncpa [#allocation15], 1 }
 0x7e6   :  { %2035 = vsyncpa [#allocation18], 1 }
 0x7e7   :  { %2036 = vsyncpa [#allocation4], 1 }
 0x7e8   :  { %2038 = vsyncpa [#allocation4 + $0x1], 1 }

</bundles_post_ra>
